<compile_context>
chip_gen: v6e
topology: v6e:2x2x1
jax: 0.10.0
libtpu: 0.0.40
codegen_flags: <defaults>
</compile_context>

<pallas_src>
import functools

import jax
import jax.numpy as jnp
from jax.experimental import pallas as pl
from jax.experimental.pallas import tpu as pltpu

STRIDE = 4


def _round_up(x, m):
    return (x + m - 1) // m * m


def _cdiv(a, b):
    return (a + b - 1) // b


def _conv_len(w_in, k, p):
    return (w_in + 2 * p - k) // STRIDE + 1


def _elu(x):
    # ELU(alpha=1): x if x > 0 else exp(x) - 1  (clamp exp arg to avoid inf).
    return jnp.where(x > 0, x, jnp.exp(jnp.minimum(x, 0.0)) - 1.0)


def bn_affine(gamma, beta, mean, var, eps=1e-5):
    scale = gamma / jnp.sqrt(var + eps)
    shift = beta - mean * scale
    return scale, shift


# ---------------------------------------------------------------------------
# Fused Pallas kernel: conv1+ELU+BN -> conv2+ELU+BN -> conv3+ELU -> avg-pool
# ---------------------------------------------------------------------------
def _make_fused_kernel(*, K1, K2, K3, P2, P3, W1, W2, W3, C1, C2, E_pad,
                       TILE_R, G1, G2, G3):
    inv_w3 = 1.0 / W3

    def kernel(x_ref, w1_ref, b1_ref, s1_ref, t1_ref,
               w2_ref, b2_ref, s2_ref, t2_ref,
               w3_ref, b3_ref,
               out_ref, h1_ref, h2_ref):
        w1 = w1_ref[...]                               # (K1, C1)       bf16
        w2 = w2_ref[...]                               # (K2*C1, C2)    bf16
        w3 = w3_ref[...]                               # (K3*C2, E_pad) bf16

        # Hoisted bias / BN broadcasts (JAX does not CSE broadcast_in_dim, so
        # doing these inside the unrolled loops would re-emit them every iter).
        bb1 = jnp.broadcast_to(b1_ref[...], (G1 * TILE_R, C1))
        ss1 = jnp.broadcast_to(s1_ref[...], (G1 * TILE_R, C1))
        tt1 = jnp.broadcast_to(t1_ref[...], (G1 * TILE_R, C1))
        bb2 = jnp.broadcast_to(b2_ref[...], (G2 * TILE_R, C2))
        ss2 = jnp.broadcast_to(s2_ref[...], (G2 * TILE_R, C2))
        tt2 = jnp.broadcast_to(t2_ref[...], (G2 * TILE_R, C2))
        bb3 = jnp.broadcast_to(b3_ref[...], (G3 * TILE_R, E_pad))

        # ---- Layer 1: Conv(1 -> C1) + ELU + BN, G1 positions per matmul -----
        # The row tile is already replicate-padded along time; each patch is a
        # static contiguous lane slice, stacked along sublanes into one big LHS.
        for g0 in range(0, W1, G1):
            gs = min(G1, W1 - g0)
            lhs = jnp.concatenate(
                [x_ref[:, (g0 + j) * STRIDE:(g0 + j) * STRIDE + K1]
                 for j in range(gs)], axis=0)                 # (gs*TR, K1) bf16
            z = jnp.dot(lhs, w1, preferred_element_type=jnp.float32)
            z = _elu(z + bb1[:gs * TILE_R])
            z = (z * ss1[:gs * TILE_R] + tt1[:gs * TILE_R]).astype(jnp.bfloat16)
            for j in range(gs):
                c = (P2 + g0 + j) * C1
                h1_ref[:, c:c + C1] = z[j * TILE_R:(j + 1) * TILE_R, :]

        # Write the replicate-padding border columns of the layer-1 output once
        # (this is conv2's padding_mode='replicate').
        left1 = h1_ref[:, P2 * C1:(P2 + 1) * C1]
        right1 = h1_ref[:, (P2 + W1 - 1) * C1:(P2 + W1) * C1]
        for p in range(P2):
            h1_ref[:, p * C1:(p + 1) * C1] = left1
            c = (P2 + W1 + p) * C1
            h1_ref[:, c:c + C1] = right1

        # ---- Layer 2: Conv(C1 -> C2) + ELU + BN, G2 positions per matmul ----
        # Each patch is one contiguous lane slice of the lane-dense h1 scratch.
        for g0 in range(0, W2, G2):
            gs = min(G2, W2 - g0)
            lhs = jnp.concatenate(
                [h1_ref[:, (g0 + j) * STRIDE * C1:
                          ((g0 + j) * STRIDE + K2) * C1]
                 for j in range(gs)], axis=0)              # (gs*TR, K2*C1) bf16
            z = jnp.dot(lhs, w2, preferred_element_type=jnp.float32)
            z = _elu(z + bb2[:gs * TILE_R])
            z = (z * ss2[:gs * TILE_R] + tt2[:gs * TILE_R]).astype(jnp.bfloat16)
            for j in range(gs):
                c = (P3 + g0 + j) * C2
                h2_ref[:, c:c + C2] = z[j * TILE_R:(j + 1) * TILE_R, :]

        left2 = h2_ref[:, P3 * C2:(P3 + 1) * C2]
        right2 = h2_ref[:, (P3 + W2 - 1) * C2:(P3 + W2) * C2]
        for p in range(P3):
            h2_ref[:, p * C2:(p + 1) * C2] = left2
            c = (P3 + W2 + p) * C2
            h2_ref[:, c:c + C2] = right2

        # ---- Layer 3: Conv(C2 -> E_pad) + ELU, fused with the average pool --
        acc = jnp.zeros((TILE_R, E_pad), jnp.float32)
        for g0 in range(0, W3, G3):
            gs = min(G3, W3 - g0)
            lhs = jnp.concatenate(
                [h2_ref[:, (g0 + j) * STRIDE * C2:
                          ((g0 + j) * STRIDE + K3) * C2]
                 for j in range(gs)], axis=0)              # (gs*TR, K3*C2) bf16
            z = jnp.dot(lhs, w3, preferred_element_type=jnp.float32)
            z = _elu(z + bb3[:gs * TILE_R])
            for j in range(gs):
                acc = acc + z[j * TILE_R:(j + 1) * TILE_R, :]
        out_ref[...] = acc * inv_w3              # lane-dense (TR, E_pad) store

    return kernel


# ---------------------------------------------------------------------------
# PatchEmbedding forward
# ---------------------------------------------------------------------------
@functools.partial(jax.jit, static_argnames=("emb_size",))
def patch_embedding_forward(x, params, emb_size):
    """x: (B, 1, channels, sample) NCHW, exactly like the nn.Module."""
    E = emb_size
    B, _cin, H, W = x.shape
    K1, K2, K3 = E // 2, E // 4, E // 8
    P1, P2, P3 = K1 // 2, K2 // 2, K3 // 2
    C1, C2 = E // 4, E // 2
    W1 = _conv_len(W, K1, P1)
    W2 = _conv_len(W1, K2, P2)
    W3 = _conv_len(W2, K3, P3)
    E_pad = _round_up(E, 128)                 # lane-dense final output
    W1P = W1 + 2 * P2                         # padded layer-1 output length
    W2P = W2 + 2 * P3                         # padded layer-2 output length

    # BatchNorm (inference) folded into per-channel scale/shift.
    s1, t1 = bn_affine(params["bn1_gamma"], params["bn1_beta"],
                       params["bn1_mean"], params["bn1_var"])
    s2, t2 = bn_affine(params["bn2_gamma"], params["bn2_beta"],
                       params["bn2_mean"], params["bn2_var"])

    # Weights -> (K*Cin, Cout) matmul layout; bf16 for the MXU.
    w1f = params["w1"].reshape(C1, K1).T.astype(jnp.bfloat16)                # (K1, C1)
    w2f = jnp.transpose(params["w2"][:, :, 0, :], (2, 1, 0)).reshape(
        K2 * C1, C2).astype(jnp.bfloat16)                                    # (K2*C1, C2)
    w3f = jnp.transpose(params["w3"][:, :, 0, :], (2, 1, 0)).reshape(K3 * C2, E)
    w3f = jnp.pad(w3f, ((0, 0), (0, E_pad - E))).astype(jnp.bfloat16)        # zero-pad Cout
    b3p = jnp.pad(params["b3"], (0, E_pad - E)).reshape(1, E_pad)

    # Rows = independent (batch, EEG-channel) time series.  Replicate-pad the
    # time axis once (layer-1 padding), zero-pad up to a 128-lane multiple so
    # the input DMA is unmasked, and cast to bf16 (halves HBM bytes).
    R = B * H
    rows = x[:, 0, :, :].reshape(R, W)
    rows = jnp.pad(rows, ((0, 0), (P1, P1)), mode="edge")
    Wp1 = W + 2 * P1
    Wp1_pad = _round_up(Wp1, 128)
    if Wp1_pad != Wp1:
        rows = jnp.pad(rows, ((0, 0), (0, Wp1_pad - Wp1)))
    rows = rows.astype(jnp.bfloat16)

    # Row tile: bound the resident working set to ~22 MiB (fits v7x's 64 MiB
    # VMEM with headroom; v5e/v6e have 128 MiB) and keep >= 2 grid steps so
    # megacore / both v7x TensorCores get work.
    per_row_bytes = (2 * Wp1_pad * 2        # double-buffered input (bf16)
                     + W1P * C1 * 2         # h1 scratch (bf16)
                     + W2P * C2 * 2         # h2 scratch (bf16)
                     + 2 * E_pad * 4)       # double-buffered output (f32)
    budget = 22 * 1024 * 1024
    cap = (budget // max(per_row_bytes, 1)) // 8 * 8
    cap = max(8, min(256, cap))
    sub = 128 if R >= 256 else 8            # lane/sublane-friendly tiles on v5e
    TILE_R = max(8, min(cap, 256, _round_up(_cdiv(R, 2), sub)))
    R_pad = max(_round_up(R, TILE_R), 2 * TILE_R)   # never a 1-step grid
    if R_pad != R:
        rows = jnp.pad(rows, ((0, R_pad - R), (0, 0)))

    # Conv output positions per MXU matmul: ~1024 sublanes of LHS per dot.
    g_target = max(1, 1024 // TILE_R)
    G1, G2, G3 = min(g_target, W1), min(g_target, W2), min(g_target, W3)

    kernel = _make_fused_kernel(K1=K1, K2=K2, K3=K3, P2=P2, P3=P3,
                                W1=W1, W2=W2, W3=W3, C1=C1, C2=C2,
                                E_pad=E_pad, TILE_R=TILE_R,
                                G1=G1, G2=G2, G3=G3)

    out = pl.pallas_call(
        kernel,
        out_shape=jax.ShapeDtypeStruct((R_pad, E_pad), jnp.float32),
        grid=(R_pad // TILE_R,),
        in_specs=[
            pl.BlockSpec((TILE_R, Wp1_pad), lambda i: (i, 0)),   # row tile
            pl.BlockSpec((K1, C1), lambda i: (0, 0)),            # w1
            pl.BlockSpec((1, C1), lambda i: (0, 0)),             # b1
            pl.BlockSpec((1, C1), lambda i: (0, 0)),             # bn1 scale
            pl.BlockSpec((1, C1), lambda i: (0, 0)),             # bn1 shift
            pl.BlockSpec((K2 * C1, C2), lambda i: (0, 0)),       # w2
            pl.BlockSpec((1, C2), lambda i: (0, 0)),             # b2
            pl.BlockSpec((1, C2), lambda i: (0, 0)),             # bn2 scale
            pl.BlockSpec((1, C2), lambda i: (0, 0)),             # bn2 shift
            pl.BlockSpec((K3 * C2, E_pad), lambda i: (0, 0)),    # w3 (padded Cout)
            pl.BlockSpec((1, E_pad), lambda i: (0, 0)),          # b3 (padded)
        ],
        out_specs=pl.BlockSpec((TILE_R, E_pad), lambda i: (i, 0)),
        scratch_shapes=[
            pltpu.VMEM((TILE_R, W1P * C1), jnp.bfloat16),        # h1 (lane-dense)
            pltpu.VMEM((TILE_R, W2P * C2), jnp.bfloat16),        # h2 (lane-dense)
        ],
        compiler_params=pltpu.CompilerParams(
            dimension_semantics=("parallel",),                   # megacore / 2 TCs
            vmem_limit_bytes=48 * 1024 * 1024,                   # < v7x's 64 MiB
        ),
    )(rows, w1f,
      params["b1"].reshape(1, C1), s1.reshape(1, C1), t1.reshape(1, C1),
      w2f,
      params["b2"].reshape(1, C2), s2.reshape(1, C2), t2.reshape(1, C2),
      w3f, b3p)

    tokens = out[:R, :E].reshape(B, H, E)
    cls = jnp.broadcast_to(params["cls"], (B, 1, E))
    return jnp.concatenate([cls, tokens], axis=1)                # (B, channels + 1, E)


# ---------------------------------------------------------------------------
# Pure-JAX reference (same bf16 MXU-input rounding) for a correctness check
# ---------------------------------------------------------------------------
def _reference_forward(x, params, emb_size):
    E = emb_size
    B, _, H, W = x.shape
    bf = lambda a: a.astype(jnp.bfloat16).astype(jnp.float32)

    def conv_row(h, w4, b, pad):
        # h: (R, Wi, Cin) f32; w4: (Cout, Cin, 1, K) torch layout.
        w3d = bf(w4[:, :, 0, :])
        k = w3d.shape[-1]
        hp = jnp.pad(h, ((0, 0), (pad, pad), (0, 0)), mode="edge")
        wo = (h.shape[1] + 2 * pad - k) // STRIDE + 1
        outs = []
        for t in range(wo):
            patch = bf(hp[:, t * STRIDE: t * STRIDE + k, :])          # (R, K, Cin)
            outs.append(jnp.einsum("rkc,ock->ro", patch, w3d) + b)
        return jnp.stack(outs, axis=1)                                # (R, Wo, Cout)

    s1, t1 = bn_affine(params["bn1_gamma"], params["bn1_beta"],
                       params["bn1_mean"], params["bn1_var"])
    s2, t2 = bn_affine(params["bn2_gamma"], params["bn2_beta"],
                       params["bn2_mean"], params["bn2_var"])

    rows = x[:, 0].reshape(B * H, W)[..., None]                       # (R, W, 1)
    h = _elu(conv_row(rows, params["w1"], params["b1"], E // 4)) * s1 + t1
    h = _elu(conv_row(h, params["w2"], params["b2"], E // 8)) * s2 + t2
    h = _elu(conv_row(h, params["w3"], params["b3"], E // 16))
    tokens = h.mean(axis=1).reshape(B, H, E)
    cls = jnp.broadcast_to(params["cls"], (B, 1, E))
    return jnp.concatenate([cls, tokens], axis=1)


# ---------------------------------------------------------------------------
# Deterministic parameter init (shapes match the nn.Module __init__)
# ---------------------------------------------------------------------------
def init_params(key, emb_size, channels):
    E = emb_size
    ks = jax.random.split(key, 12)
    p = {}
    p["w1"] = 0.1 * jax.random.normal(ks[0], (E // 4, 1, 1, E // 2), jnp.float32)
    p["b1"] = 0.1 * jax.random.normal(ks[1], (E // 4,), jnp.float32)
    p["w2"] = 0.1 * jax.random.normal(ks[2], (E // 2, E // 4, 1, E // 4), jnp.float32)
    p["b2"] = 0.1 * jax.random.normal(ks[3], (E // 2,), jnp.float32)
    p["w3"] = 0.1 * jax.random.normal(ks[4], (E, E // 2, 1, E // 8), jnp.float32)
    p["b3"] = 0.1 * jax.random.normal(ks[5], (E,), jnp.float32)
    p["bn1_gamma"] = 1.0 + 0.1 * jax.random.normal(ks[6], (E // 4,), jnp.float32)
    p["bn1_beta"] = 0.1 * jax.random.normal(ks[7], (E // 4,), jnp.float32)
    p["bn1_mean"] = 0.1 * jax.random.normal(ks[8], (E // 4,), jnp.float32)
    p["bn1_var"] = jax.random.uniform(ks[9], (E // 4,), jnp.float32, 0.5, 1.5)
    p["bn2_gamma"] = 1.0 + 0.1 * jax.random.normal(ks[10], (E // 2,), jnp.float32)
    p["bn2_beta"] = 0.1 * jax.random.normal(ks[11], (E // 2,), jnp.float32)
    p["bn2_mean"] = jnp.zeros((E // 2,), jnp.float32)
    p["bn2_var"] = jnp.ones((E // 2,), jnp.float32)
    p["cls"] = jax.random.normal(jax.random.fold_in(key, 99), (1, 1, E), jnp.float32)
    return p


if __name__ == "__main__":
    # Small config consistent with the module: emb_size=16, channels=4, sample=64.
    EMB, CH, SAMPLE, BATCH = 16, 4, 64, 2

    key = jax.random.PRNGKey(0)
    pkey, xkey = jax.random.split(key)
    params = init_params(pkey, EMB, CH)

    x = jax.random.normal(xkey, (BATCH, 1, CH, SAMPLE), jnp.float32)   # NCHW

    out = patch_embedding_forward(x, params, EMB)
    out = jax.block_until_ready(out)

    assert out.shape == (BATCH, CH + 1, EMB), out.shape
    assert bool(jnp.all(jnp.isfinite(out)))

    ref = _reference_forward(x, params, EMB)
    assert bool(jnp.allclose(out, ref, atol=1e-2, rtol=1e-2)), (
        float(jnp.max(jnp.abs(out - ref))))

    print("KERNEL_OK")
</pallas_src>

<mosaic_0001>
module attributes {stable_mosaic.version = 11 : i64} {
  func.func @kernel(%arg0: i32, %arg1: memref<8x128xbf16, #tpu.memory_space<vmem>>, %arg2: memref<8x4xbf16, #tpu.memory_space<vmem>>, %arg3: memref<1x4xf32, #tpu.memory_space<vmem>>, %arg4: memref<1x4xf32, #tpu.memory_space<vmem>>, %arg5: memref<1x4xf32, #tpu.memory_space<vmem>>, %arg6: memref<16x8xbf16, #tpu.memory_space<vmem>>, %arg7: memref<1x8xf32, #tpu.memory_space<vmem>>, %arg8: memref<1x8xf32, #tpu.memory_space<vmem>>, %arg9: memref<1x8xf32, #tpu.memory_space<vmem>>, %arg10: memref<16x128xbf16, #tpu.memory_space<vmem>>, %arg11: memref<1x128xf32, #tpu.memory_space<vmem>>, %arg12: memref<8x128xf32, #tpu.memory_space<vmem>>, %arg13: memref<8x84xbf16, #tpu.memory_space<vmem>>, %arg14: memref<8x56xbf16, #tpu.memory_space<vmem>>) attributes {dimension_semantics = [#tpu.dimension_semantics<parallel>], iteration_bounds = array<i64: 2>, scalar_prefetch = 0 : i64, scratch_operands = 2 : i64, tpu.core_type = #tpu.core_type<tc>, window_params = [{transform_indices = @transform_0, window_bounds = array<i64: 8, 128>}, {pipeline_mode = #tpu.pipeline_mode<synchronous>, transform_indices = @transform_1, window_bounds = array<i64: 8, 4>}, {pipeline_mode = #tpu.pipeline_mode<synchronous>, transform_indices = @transform_2, window_bounds = array<i64: 1, 4>}, {pipeline_mode = #tpu.pipeline_mode<synchronous>, transform_indices = @transform_3, window_bounds = array<i64: 1, 4>}, {pipeline_mode = #tpu.pipeline_mode<synchronous>, transform_indices = @transform_4, window_bounds = array<i64: 1, 4>}, {pipeline_mode = #tpu.pipeline_mode<synchronous>, transform_indices = @transform_5, window_bounds = array<i64: 16, 8>}, {pipeline_mode = #tpu.pipeline_mode<synchronous>, transform_indices = @transform_6, window_bounds = array<i64: 1, 8>}, {pipeline_mode = #tpu.pipeline_mode<synchronous>, transform_indices = @transform_7, window_bounds = array<i64: 1, 8>}, {pipeline_mode = #tpu.pipeline_mode<synchronous>, transform_indices = @transform_8, window_bounds = array<i64: 1, 8>}, {pipeline_mode = #tpu.pipeline_mode<synchronous>, transform_indices = @transform_9, window_bounds = array<i64: 16, 128>}, {pipeline_mode = #tpu.pipeline_mode<synchronous>, transform_indices = @transform_10, window_bounds = array<i64: 1, 128>}, {transform_indices = @transform_11, window_bounds = array<i64: 8, 128>}]} {
    %c0 = arith.constant 0 : index
    %c0_0 = arith.constant 0 : index
    %0 = vector.load %arg2[%c0, %c0_0] : memref<8x4xbf16, #tpu.memory_space<vmem>>, vector<8x4xbf16>
    %c0_1 = arith.constant 0 : index
    %c0_2 = arith.constant 0 : index
    %1 = vector.load %arg6[%c0_1, %c0_2] : memref<16x8xbf16, #tpu.memory_space<vmem>>, vector<16x8xbf16>
    %c0_3 = arith.constant 0 : index
    %c0_4 = arith.constant 0 : index
    %2 = vector.load %arg10[%c0_3, %c0_4] : memref<16x128xbf16, #tpu.memory_space<vmem>>, vector<16x128xbf16>
    %c0_5 = arith.constant 0 : index
    %c0_6 = arith.constant 0 : index
    %3 = vector.load %arg3[%c0_5, %c0_6] : memref<1x4xf32, #tpu.memory_space<vmem>>, vector<1x4xf32>
    %4 = vector.shape_cast %3 : vector<1x4xf32> to vector<1x4xf32>
    %5 = vector.broadcast %4 : vector<1x4xf32> to vector<136x4xf32>
    %c0_7 = arith.constant 0 : index
    %c0_8 = arith.constant 0 : index
    %6 = vector.load %arg4[%c0_7, %c0_8] : memref<1x4xf32, #tpu.memory_space<vmem>>, vector<1x4xf32>
    %7 = vector.shape_cast %6 : vector<1x4xf32> to vector<1x4xf32>
    %8 = vector.broadcast %7 : vector<1x4xf32> to vector<136x4xf32>
    %c0_9 = arith.constant 0 : index
    %c0_10 = arith.constant 0 : index
    %9 = vector.load %arg5[%c0_9, %c0_10] : memref<1x4xf32, #tpu.memory_space<vmem>>, vector<1x4xf32>
    %10 = vector.shape_cast %9 : vector<1x4xf32> to vector<1x4xf32>
    %11 = vector.broadcast %10 : vector<1x4xf32> to vector<136x4xf32>
    %c0_11 = arith.constant 0 : index
    %c0_12 = arith.constant 0 : index
    %12 = vector.load %arg7[%c0_11, %c0_12] : memref<1x8xf32, #tpu.memory_space<vmem>>, vector<1x8xf32>
    %13 = vector.shape_cast %12 : vector<1x8xf32> to vector<1x8xf32>
    %14 = vector.broadcast %13 : vector<1x8xf32> to vector<40x8xf32>
    %c0_13 = arith.constant 0 : index
    %c0_14 = arith.constant 0 : index
    %15 = vector.load %arg8[%c0_13, %c0_14] : memref<1x8xf32, #tpu.memory_space<vmem>>, vector<1x8xf32>
    %16 = vector.shape_cast %15 : vector<1x8xf32> to vector<1x8xf32>
    %17 = vector.broadcast %16 : vector<1x8xf32> to vector<40x8xf32>
    %c0_15 = arith.constant 0 : index
    %c0_16 = arith.constant 0 : index
    %18 = vector.load %arg9[%c0_15, %c0_16] : memref<1x8xf32, #tpu.memory_space<vmem>>, vector<1x8xf32>
    %19 = vector.shape_cast %18 : vector<1x8xf32> to vector<1x8xf32>
    %20 = vector.broadcast %19 : vector<1x8xf32> to vector<40x8xf32>
    %c0_17 = arith.constant 0 : index
    %c0_18 = arith.constant 0 : index
    %21 = vector.load %arg11[%c0_17, %c0_18] : memref<1x128xf32, #tpu.memory_space<vmem>>, vector<1x128xf32>
    %22 = vector.shape_cast %21 : vector<1x128xf32> to vector<1x128xf32>
    %23 = vector.broadcast %22 : vector<1x128xf32> to vector<16x128xf32>
    %c0_19 = arith.constant 0 : index
    %c0_20 = arith.constant 0 : index
    %24 = vector.load %arg1[%c0_19, %c0_20] : memref<8x128xbf16, #tpu.memory_space<vmem>>, vector<8x8xbf16>
    %c0_21 = arith.constant 0 : index
    %c4 = arith.constant 4 : index
    %25 = vector.load %arg1[%c0_21, %c4] : memref<8x128xbf16, #tpu.memory_space<vmem>>, vector<8x8xbf16>
    %c0_22 = arith.constant 0 : index
    %c8 = arith.constant 8 : index
    %26 = vector.load %arg1[%c0_22, %c8] : memref<8x128xbf16, #tpu.memory_space<vmem>>, vector<8x8xbf16>
    %c0_23 = arith.constant 0 : index
    %c12 = arith.constant 12 : index
    %27 = vector.load %arg1[%c0_23, %c12] : memref<8x128xbf16, #tpu.memory_space<vmem>>, vector<8x8xbf16>
    %c0_24 = arith.constant 0 : index
    %c16 = arith.constant 16 : index
    %28 = vector.load %arg1[%c0_24, %c16] : memref<8x128xbf16, #tpu.memory_space<vmem>>, vector<8x8xbf16>
    %c0_25 = arith.constant 0 : index
    %c20 = arith.constant 20 : index
    %29 = vector.load %arg1[%c0_25, %c20] : memref<8x128xbf16, #tpu.memory_space<vmem>>, vector<8x8xbf16>
    %c0_26 = arith.constant 0 : index
    %c24 = arith.constant 24 : index
    %30 = vector.load %arg1[%c0_26, %c24] : memref<8x128xbf16, #tpu.memory_space<vmem>>, vector<8x8xbf16>
    %c0_27 = arith.constant 0 : index
    %c28 = arith.constant 28 : index
    %31 = vector.load %arg1[%c0_27, %c28] : memref<8x128xbf16, #tpu.memory_space<vmem>>, vector<8x8xbf16>
    %c0_28 = arith.constant 0 : index
    %c32 = arith.constant 32 : index
    %32 = vector.load %arg1[%c0_28, %c32] : memref<8x128xbf16, #tpu.memory_space<vmem>>, vector<8x8xbf16>
    %c0_29 = arith.constant 0 : index
    %c36 = arith.constant 36 : index
    %33 = vector.load %arg1[%c0_29, %c36] : memref<8x128xbf16, #tpu.memory_space<vmem>>, vector<8x8xbf16>
    %c0_30 = arith.constant 0 : index
    %c40 = arith.constant 40 : index
    %34 = vector.load %arg1[%c0_30, %c40] : memref<8x128xbf16, #tpu.memory_space<vmem>>, vector<8x8xbf16>
    %c0_31 = arith.constant 0 : index
    %c44 = arith.constant 44 : index
    %35 = vector.load %arg1[%c0_31, %c44] : memref<8x128xbf16, #tpu.memory_space<vmem>>, vector<8x8xbf16>
    %c0_32 = arith.constant 0 : index
    %c48 = arith.constant 48 : index
    %36 = vector.load %arg1[%c0_32, %c48] : memref<8x128xbf16, #tpu.memory_space<vmem>>, vector<8x8xbf16>
    %c0_33 = arith.constant 0 : index
    %c52 = arith.constant 52 : index
    %37 = vector.load %arg1[%c0_33, %c52] : memref<8x128xbf16, #tpu.memory_space<vmem>>, vector<8x8xbf16>
    %c0_34 = arith.constant 0 : index
    %c56 = arith.constant 56 : index
    %38 = vector.load %arg1[%c0_34, %c56] : memref<8x128xbf16, #tpu.memory_space<vmem>>, vector<8x8xbf16>
    %c0_35 = arith.constant 0 : index
    %c60 = arith.constant 60 : index
    %39 = vector.load %arg1[%c0_35, %c60] : memref<8x128xbf16, #tpu.memory_space<vmem>>, vector<8x8xbf16>
    %c0_36 = arith.constant 0 : index
    %c64 = arith.constant 64 : index
    %40 = vector.load %arg1[%c0_36, %c64] : memref<8x128xbf16, #tpu.memory_space<vmem>>, vector<8x8xbf16>
    %41 = tpu.concatenate %24, %25, %26, %27, %28, %29, %30, %31, %32, %33, %34, %35, %36, %37, %38, %39 in 0 : vector<8x8xbf16>, vector<8x8xbf16>, vector<8x8xbf16>, vector<8x8xbf16>, vector<8x8xbf16>, vector<8x8xbf16>, vector<8x8xbf16>, vector<8x8xbf16>, vector<8x8xbf16>, vector<8x8xbf16>, vector<8x8xbf16>, vector<8x8xbf16>, vector<8x8xbf16>, vector<8x8xbf16>, vector<8x8xbf16>, vector<8x8xbf16> -> vector<128x8xbf16>
    %42 = tpu.concatenate %41, %40 in 0 : vector<128x8xbf16>, vector<8x8xbf16> -> vector<136x8xbf16>
    %cst = arith.constant dense<0.000000e+00> : vector<136x4xf32>
    %43 = tpu.matmul %42, %0, %cst {dimension_numbers = #tpu.dot_dimension_numbers<[1], [0], [0], [1], [0, 0, 1, 1], [], []>} : vector<136x8xbf16>, vector<8x4xbf16>, vector<136x4xf32> -> vector<136x4xf32>
    %44 = arith.addf %43, %5 : vector<136x4xf32>
    %cst_37 = arith.constant 0.000000e+00 : f32
    %45 = vector.broadcast %cst_37 : f32 to vector<136x4xf32>
    %46 = arith.cmpf ogt, %44, %45 : vector<136x4xf32>
    %cst_38 = arith.constant 0.000000e+00 : f32
    %47 = vector.broadcast %cst_38 : f32 to vector<136x4xf32>
    %48 = arith.minimumf %44, %47 : vector<136x4xf32>
    %49 = math.exp %48 : vector<136x4xf32>
    %cst_39 = arith.constant 1.000000e+00 : f32
    %50 = vector.broadcast %cst_39 : f32 to vector<136x4xf32>
    %51 = arith.subf %49, %50 : vector<136x4xf32>
    %52 = arith.select %46, %44, %51 : vector<136x4xi1>, vector<136x4xf32>
    %53 = arith.mulf %52, %8 : vector<136x4xf32>
    %54 = arith.addf %53, %11 : vector<136x4xf32>
    %55 = arith.truncf %54 : vector<136x4xf32> to vector<136x4xbf16>
    %56 = vector.extract_strided_slice %55 {offsets = [0, 0], sizes = [8, 4], strides = [1, 1]} : vector<136x4xbf16> to vector<8x4xbf16>
    %c0_40 = arith.constant 0 : index
    %c8_41 = arith.constant 8 : index
    %57 = vector.load %arg13[%c0_40, %c8_41] : memref<8x84xbf16, #tpu.memory_space<vmem>>, vector<8x4xbf16>
    tpu.vector_store %arg13[%c0_40, %c8_41], %56 {strides = array<i32>} : memref<8x84xbf16, #tpu.memory_space<vmem>>, vector<8x4xbf16>,
    %58 = vector.extract_strided_slice %55 {offsets = [8, 0], sizes = [8, 4], strides = [1, 1]} : vector<136x4xbf16> to vector<8x4xbf16>
    %c0_42 = arith.constant 0 : index
    %c12_43 = arith.constant 12 : index
    %59 = vector.load %arg13[%c0_42, %c12_43] : memref<8x84xbf16, #tpu.memory_space<vmem>>, vector<8x4xbf16>
    tpu.vector_store %arg13[%c0_42, %c12_43], %58 {strides = array<i32>} : memref<8x84xbf16, #tpu.memory_space<vmem>>, vector<8x4xbf16>,
    %60 = vector.extract_strided_slice %55 {offsets = [16, 0], sizes = [8, 4], strides = [1, 1]} : vector<136x4xbf16> to vector<8x4xbf16>
    %c0_44 = arith.constant 0 : index
    %c16_45 = arith.constant 16 : index
    %61 = vector.load %arg13[%c0_44, %c16_45] : memref<8x84xbf16, #tpu.memory_space<vmem>>, vector<8x4xbf16>
    tpu.vector_store %arg13[%c0_44, %c16_45], %60 {strides = array<i32>} : memref<8x84xbf16, #tpu.memory_space<vmem>>, vector<8x4xbf16>,
    %62 = vector.extract_strided_slice %55 {offsets = [24, 0], sizes = [8, 4], strides = [1, 1]} : vector<136x4xbf16> to vector<8x4xbf16>
    %c0_46 = arith.constant 0 : index
    %c20_47 = arith.constant 20 : index
    %63 = vector.load %arg13[%c0_46, %c20_47] : memref<8x84xbf16, #tpu.memory_space<vmem>>, vector<8x4xbf16>
    tpu.vector_store %arg13[%c0_46, %c20_47], %62 {strides = array<i32>} : memref<8x84xbf16, #tpu.memory_space<vmem>>, vector<8x4xbf16>,
    %64 = vector.extract_strided_slice %55 {offsets = [32, 0], sizes = [8, 4], strides = [1, 1]} : vector<136x4xbf16> to vector<8x4xbf16>
    %c0_48 = arith.constant 0 : index
    %c24_49 = arith.constant 24 : index
    %65 = vector.load %arg13[%c0_48, %c24_49] : memref<8x84xbf16, #tpu.memory_space<vmem>>, vector<8x4xbf16>
    tpu.vector_store %arg13[%c0_48, %c24_49], %64 {strides = array<i32>} : memref<8x84xbf16, #tpu.memory_space<vmem>>, vector<8x4xbf16>,
    %66 = vector.extract_strided_slice %55 {offsets = [40, 0], sizes = [8, 4], strides = [1, 1]} : vector<136x4xbf16> to vector<8x4xbf16>
    %c0_50 = arith.constant 0 : index
    %c28_51 = arith.constant 28 : index
    %67 = vector.load %arg13[%c0_50, %c28_51] : memref<8x84xbf16, #tpu.memory_space<vmem>>, vector<8x4xbf16>
    tpu.vector_store %arg13[%c0_50, %c28_51], %66 {strides = array<i32>} : memref<8x84xbf16, #tpu.memory_space<vmem>>, vector<8x4xbf16>,
    %68 = vector.extract_strided_slice %55 {offsets = [48, 0], sizes = [8, 4], strides = [1, 1]} : vector<136x4xbf16> to vector<8x4xbf16>
    %c0_52 = arith.constant 0 : index
    %c32_53 = arith.constant 32 : index
    %69 = vector.load %arg13[%c0_52, %c32_53] : memref<8x84xbf16, #tpu.memory_space<vmem>>, vector<8x4xbf16>
    tpu.vector_store %arg13[%c0_52, %c32_53], %68 {strides = array<i32>} : memref<8x84xbf16, #tpu.memory_space<vmem>>, vector<8x4xbf16>,
    %70 = vector.extract_strided_slice %55 {offsets = [56, 0], sizes = [8, 4], strides = [1, 1]} : vector<136x4xbf16> to vector<8x4xbf16>
    %c0_54 = arith.constant 0 : index
    %c36_55 = arith.constant 36 : index
    %71 = vector.load %arg13[%c0_54, %c36_55] : memref<8x84xbf16, #tpu.memory_space<vmem>>, vector<8x4xbf16>
    tpu.vector_store %arg13[%c0_54, %c36_55], %70 {strides = array<i32>} : memref<8x84xbf16, #tpu.memory_space<vmem>>, vector<8x4xbf16>,
    %72 = vector.extract_strided_slice %55 {offsets = [64, 0], sizes = [8, 4], strides = [1, 1]} : vector<136x4xbf16> to vector<8x4xbf16>
    %c0_56 = arith.constant 0 : index
    %c40_57 = arith.constant 40 : index
    %73 = vector.load %arg13[%c0_56, %c40_57] : memref<8x84xbf16, #tpu.memory_space<vmem>>, vector<8x4xbf16>
    tpu.vector_store %arg13[%c0_56, %c40_57], %72 {strides = array<i32>} : memref<8x84xbf16, #tpu.memory_space<vmem>>, vector<8x4xbf16>,
    %74 = vector.extract_strided_slice %55 {offsets = [72, 0], sizes = [8, 4], strides = [1, 1]} : vector<136x4xbf16> to vector<8x4xbf16>
    %c0_58 = arith.constant 0 : index
    %c44_59 = arith.constant 44 : index
    %75 = vector.load %arg13[%c0_58, %c44_59] : memref<8x84xbf16, #tpu.memory_space<vmem>>, vector<8x4xbf16>
    tpu.vector_store %arg13[%c0_58, %c44_59], %74 {strides = array<i32>} : memref<8x84xbf16, #tpu.memory_space<vmem>>, vector<8x4xbf16>,
    %76 = vector.extract_strided_slice %55 {offsets = [80, 0], sizes = [8, 4], strides = [1, 1]} : vector<136x4xbf16> to vector<8x4xbf16>
    %c0_60 = arith.constant 0 : index
    %c48_61 = arith.constant 48 : index
    %77 = vector.load %arg13[%c0_60, %c48_61] : memref<8x84xbf16, #tpu.memory_space<vmem>>, vector<8x4xbf16>
    tpu.vector_store %arg13[%c0_60, %c48_61], %76 {strides = array<i32>} : memref<8x84xbf16, #tpu.memory_space<vmem>>, vector<8x4xbf16>,
    %78 = vector.extract_strided_slice %55 {offsets = [88, 0], sizes = [8, 4], strides = [1, 1]} : vector<136x4xbf16> to vector<8x4xbf16>
    %c0_62 = arith.constant 0 : index
    %c52_63 = arith.constant 52 : index
    %79 = vector.load %arg13[%c0_62, %c52_63] : memref<8x84xbf16, #tpu.memory_space<vmem>>, vector<8x4xbf16>
    tpu.vector_store %arg13[%c0_62, %c52_63], %78 {strides = array<i32>} : memref<8x84xbf16, #tpu.memory_space<vmem>>, vector<8x4xbf16>,
    %80 = vector.extract_strided_slice %55 {offsets = [96, 0], sizes = [8, 4], strides = [1, 1]} : vector<136x4xbf16> to vector<8x4xbf16>
    %c0_64 = arith.constant 0 : index
    %c56_65 = arith.constant 56 : index
    %81 = vector.load %arg13[%c0_64, %c56_65] : memref<8x84xbf16, #tpu.memory_space<vmem>>, vector<8x4xbf16>
    tpu.vector_store %arg13[%c0_64, %c56_65], %80 {strides = array<i32>} : memref<8x84xbf16, #tpu.memory_space<vmem>>, vector<8x4xbf16>,
    %82 = vector.extract_strided_slice %55 {offsets = [104, 0], sizes = [8, 4], strides = [1, 1]} : vector<136x4xbf16> to vector<8x4xbf16>
    %c0_66 = arith.constant 0 : index
    %c60_67 = arith.constant 60 : index
    %83 = vector.load %arg13[%c0_66, %c60_67] : memref<8x84xbf16, #tpu.memory_space<vmem>>, vector<8x4xbf16>
    tpu.vector_store %arg13[%c0_66, %c60_67], %82 {strides = array<i32>} : memref<8x84xbf16, #tpu.memory_space<vmem>>, vector<8x4xbf16>,
    %84 = vector.extract_strided_slice %55 {offsets = [112, 0], sizes = [8, 4], strides = [1, 1]} : vector<136x4xbf16> to vector<8x4xbf16>
    %c0_68 = arith.constant 0 : index
    %c64_69 = arith.constant 64 : index
    %85 = vector.load %arg13[%c0_68, %c64_69] : memref<8x84xbf16, #tpu.memory_space<vmem>>, vector<8x4xbf16>
    tpu.vector_store %arg13[%c0_68, %c64_69], %84 {strides = array<i32>} : memref<8x84xbf16, #tpu.memory_space<vmem>>, vector<8x4xbf16>,
    %86 = vector.extract_strided_slice %55 {offsets = [120, 0], sizes = [8, 4], strides = [1, 1]} : vector<136x4xbf16> to vector<8x4xbf16>
    %c0_70 = arith.constant 0 : index
    %c68 = arith.constant 68 : index
    %87 = vector.load %arg13[%c0_70, %c68] : memref<8x84xbf16, #tpu.memory_space<vmem>>, vector<8x4xbf16>
    tpu.vector_store %arg13[%c0_70, %c68], %86 {strides = array<i32>} : memref<8x84xbf16, #tpu.memory_space<vmem>>, vector<8x4xbf16>,
    %88 = vector.extract_strided_slice %55 {offsets = [128, 0], sizes = [8, 4], strides = [1, 1]} : vector<136x4xbf16> to vector<8x4xbf16>
    %c0_71 = arith.constant 0 : index
    %c72 = arith.constant 72 : index
    %89 = vector.load %arg13[%c0_71, %c72] : memref<8x84xbf16, #tpu.memory_space<vmem>>, vector<8x4xbf16>
    tpu.vector_store %arg13[%c0_71, %c72], %88 {strides = array<i32>} : memref<8x84xbf16, #tpu.memory_space<vmem>>, vector<8x4xbf16>,
    %c0_72 = arith.constant 0 : index
    %c8_73 = arith.constant 8 : index
    %90 = vector.load %arg13[%c0_72, %c8_73] : memref<8x84xbf16, #tpu.memory_space<vmem>>, vector<8x4xbf16>
    %c0_74 = arith.constant 0 : index
    %c72_75 = arith.constant 72 : index
    %91 = vector.load %arg13[%c0_74, %c72_75] : memref<8x84xbf16, #tpu.memory_space<vmem>>, vector<8x4xbf16>
    %c0_76 = arith.constant 0 : index
    %c0_77 = arith.constant 0 : index
    %92 = vector.load %arg13[%c0_76, %c0_77] : memref<8x84xbf16, #tpu.memory_space<vmem>>, vector<8x4xbf16>
    tpu.vector_store %arg13[%c0_76, %c0_77], %90 {strides = array<i32>} : memref<8x84xbf16, #tpu.memory_space<vmem>>, vector<8x4xbf16>,
    %c0_78 = arith.constant 0 : index
    %c76 = arith.constant 76 : index
    %93 = vector.load %arg13[%c0_78, %c76] : memref<8x84xbf16, #tpu.memory_space<vmem>>, vector<8x4xbf16>
    tpu.vector_store %arg13[%c0_78, %c76], %91 {strides = array<i32>} : memref<8x84xbf16, #tpu.memory_space<vmem>>, vector<8x4xbf16>,
    %c0_79 = arith.constant 0 : index
    %c4_80 = arith.constant 4 : index
    %94 = vector.load %arg13[%c0_79, %c4_80] : memref<8x84xbf16, #tpu.memory_space<vmem>>, vector<8x4xbf16>
    tpu.vector_store %arg13[%c0_79, %c4_80], %90 {strides = array<i32>} : memref<8x84xbf16, #tpu.memory_space<vmem>>, vector<8x4xbf16>,
    %c0_81 = arith.constant 0 : index
    %c80 = arith.constant 80 : index
    %95 = vector.load %arg13[%c0_81, %c80] : memref<8x84xbf16, #tpu.memory_space<vmem>>, vector<8x4xbf16>
    tpu.vector_store %arg13[%c0_81, %c80], %91 {strides = array<i32>} : memref<8x84xbf16, #tpu.memory_space<vmem>>, vector<8x4xbf16>,
    %c0_82 = arith.constant 0 : index
    %c0_83 = arith.constant 0 : index
    %96 = vector.load %arg13[%c0_82, %c0_83] : memref<8x84xbf16, #tpu.memory_space<vmem>>, vector<8x16xbf16>
    %c0_84 = arith.constant 0 : index
    %c16_85 = arith.constant 16 : index
    %97 = vector.load %arg13[%c0_84, %c16_85] : memref<8x84xbf16, #tpu.memory_space<vmem>>, vector<8x16xbf16>
    %c0_86 = arith.constant 0 : index
    %c32_87 = arith.constant 32 : index
    %98 = vector.load %arg13[%c0_86, %c32_87] : memref<8x84xbf16, #tpu.memory_space<vmem>>, vector<8x16xbf16>
    %c0_88 = arith.constant 0 : index
    %c48_89 = arith.constant 48 : index
    %99 = vector.load %arg13[%c0_88, %c48_89] : memref<8x84xbf16, #tpu.memory_space<vmem>>, vector<8x16xbf16>
    %c0_90 = arith.constant 0 : index
    %c64_91 = arith.constant 64 : index
    %100 = vector.load %arg13[%c0_90, %c64_91] : memref<8x84xbf16, #tpu.memory_space<vmem>>, vector<8x16xbf16>
    %101 = tpu.concatenate %96, %97, %98, %99, %100 in 0 : vector<8x16xbf16>, vector<8x16xbf16>, vector<8x16xbf16>, vector<8x16xbf16>, vector<8x16xbf16> -> vector<40x16xbf16>
    %cst_92 = arith.constant dense<0.000000e+00> : vector<40x8xf32>
    %102 = tpu.matmul %101, %1, %cst_92 {dimension_numbers = #tpu.dot_dimension_numbers<[1], [0], [0], [1], [0, 0, 1, 1], [], []>} : vector<40x16xbf16>, vector<16x8xbf16>, vector<40x8xf32> -> vector<40x8xf32>
    %103 = arith.addf %102, %14 : vector<40x8xf32>
    %cst_93 = arith.constant 0.000000e+00 : f32
    %104 = vector.broadcast %cst_93 : f32 to vector<40x8xf32>
    %105 = arith.cmpf ogt, %103, %104 : vector<40x8xf32>
    %cst_94 = arith.constant 0.000000e+00 : f32
    %106 = vector.broadcast %cst_94 : f32 to vector<40x8xf32>
    %107 = arith.minimumf %103, %106 : vector<40x8xf32>
    %108 = math.exp %107 : vector<40x8xf32>
    %cst_95 = arith.constant 1.000000e+00 : f32
    %109 = vector.broadcast %cst_95 : f32 to vector<40x8xf32>
    %110 = arith.subf %108, %109 : vector<40x8xf32>
    %111 = arith.select %105, %103, %110 : vector<40x8xi1>, vector<40x8xf32>
    %112 = arith.mulf %111, %17 : vector<40x8xf32>
    %113 = arith.addf %112, %20 : vector<40x8xf32>
    %114 = arith.truncf %113 : vector<40x8xf32> to vector<40x8xbf16>
    %115 = vector.extract_strided_slice %114 {offsets = [0, 0], sizes = [8, 8], strides = [1, 1]} : vector<40x8xbf16> to vector<8x8xbf16>
    %c0_96 = arith.constant 0 : index
    %c8_97 = arith.constant 8 : index
    %116 = vector.load %arg14[%c0_96, %c8_97] : memref<8x56xbf16, #tpu.memory_space<vmem>>, vector<8x8xbf16>
    tpu.vector_store %arg14[%c0_96, %c8_97], %115 {strides = array<i32>} : memref<8x56xbf16, #tpu.memory_space<vmem>>, vector<8x8xbf16>,
    %117 = vector.extract_strided_slice %114 {offsets = [8, 0], sizes = [8, 8], strides = [1, 1]} : vector<40x8xbf16> to vector<8x8xbf16>
    %c0_98 = arith.constant 0 : index
    %c16_99 = arith.constant 16 : index
    %118 = vector.load %arg14[%c0_98, %c16_99] : memref<8x56xbf16, #tpu.memory_space<vmem>>, vector<8x8xbf16>
    tpu.vector_store %arg14[%c0_98, %c16_99], %117 {strides = array<i32>} : memref<8x56xbf16, #tpu.memory_space<vmem>>, vector<8x8xbf16>,
    %119 = vector.extract_strided_slice %114 {offsets = [16, 0], sizes = [8, 8], strides = [1, 1]} : vector<40x8xbf16> to vector<8x8xbf16>
    %c0_100 = arith.constant 0 : index
    %c24_101 = arith.constant 24 : index
    %120 = vector.load %arg14[%c0_100, %c24_101] : memref<8x56xbf16, #tpu.memory_space<vmem>>, vector<8x8xbf16>
    tpu.vector_store %arg14[%c0_100, %c24_101], %119 {strides = array<i32>} : memref<8x56xbf16, #tpu.memory_space<vmem>>, vector<8x8xbf16>,
    %121 = vector.extract_strided_slice %114 {offsets = [24, 0], sizes = [8, 8], strides = [1, 1]} : vector<40x8xbf16> to vector<8x8xbf16>
    %c0_102 = arith.constant 0 : index
    %c32_103 = arith.constant 32 : index
    %122 = vector.load %arg14[%c0_102, %c32_103] : memref<8x56xbf16, #tpu.memory_space<vmem>>, vector<8x8xbf16>
    tpu.vector_store %arg14[%c0_102, %c32_103], %121 {strides = array<i32>} : memref<8x56xbf16, #tpu.memory_space<vmem>>, vector<8x8xbf16>,
    %123 = vector.extract_strided_slice %114 {offsets = [32, 0], sizes = [8, 8], strides = [1, 1]} : vector<40x8xbf16> to vector<8x8xbf16>
    %c0_104 = arith.constant 0 : index
    %c40_105 = arith.constant 40 : index
    %124 = vector.load %arg14[%c0_104, %c40_105] : memref<8x56xbf16, #tpu.memory_space<vmem>>, vector<8x8xbf16>
    tpu.vector_store %arg14[%c0_104, %c40_105], %123 {strides = array<i32>} : memref<8x56xbf16, #tpu.memory_space<vmem>>, vector<8x8xbf16>,
    %c0_106 = arith.constant 0 : index
    %c8_107 = arith.constant 8 : index
    %125 = vector.load %arg14[%c0_106, %c8_107] : memref<8x56xbf16, #tpu.memory_space<vmem>>, vector<8x8xbf16>
    %c0_108 = arith.constant 0 : index
    %c40_109 = arith.constant 40 : index
    %126 = vector.load %arg14[%c0_108, %c40_109] : memref<8x56xbf16, #tpu.memory_space<vmem>>, vector<8x8xbf16>
    %c0_110 = arith.constant 0 : index
    %c0_111 = arith.constant 0 : index
    %127 = vector.load %arg14[%c0_110, %c0_111] : memref<8x56xbf16, #tpu.memory_space<vmem>>, vector<8x8xbf16>
    tpu.vector_store %arg14[%c0_110, %c0_111], %125 {strides = array<i32>} : memref<8x56xbf16, #tpu.memory_space<vmem>>, vector<8x8xbf16>,
    %c0_112 = arith.constant 0 : index
    %c48_113 = arith.constant 48 : index
    %128 = vector.load %arg14[%c0_112, %c48_113] : memref<8x56xbf16, #tpu.memory_space<vmem>>, vector<8x8xbf16>
    tpu.vector_store %arg14[%c0_112, %c48_113], %126 {strides = array<i32>} : memref<8x56xbf16, #tpu.memory_space<vmem>>, vector<8x8xbf16>,
    %cst_114 = arith.constant 0.000000e+00 : f32
    %129 = vector.broadcast %cst_114 : f32 to vector<8x128xf32>
    %c0_115 = arith.constant 0 : index
    %c0_116 = arith.constant 0 : index
    %130 = vector.load %arg14[%c0_115, %c0_116] : memref<8x56xbf16, #tpu.memory_space<vmem>>, vector<8x16xbf16>
    %c0_117 = arith.constant 0 : index
    %c32_118 = arith.constant 32 : index
    %131 = vector.load %arg14[%c0_117, %c32_118] : memref<8x56xbf16, #tpu.memory_space<vmem>>, vector<8x16xbf16>
    %132 = tpu.concatenate %130, %131 in 0 : vector<8x16xbf16>, vector<8x16xbf16> -> vector<16x16xbf16>
    %cst_119 = arith.constant dense<0.000000e+00> : vector<16x128xf32>
    %133 = tpu.matmul %132, %2, %cst_119 {dimension_numbers = #tpu.dot_dimension_numbers<[1], [0], [0], [1], [0, 0, 1, 1], [], []>} : vector<16x16xbf16>, vector<16x128xbf16>, vector<16x128xf32> -> vector<16x128xf32>
    %134 = arith.addf %133, %23 : vector<16x128xf32>
    %cst_120 = arith.constant 0.000000e+00 : f32
    %135 = vector.broadcast %cst_120 : f32 to vector<16x128xf32>
    %136 = arith.cmpf ogt, %134, %135 : vector<16x128xf32>
    %cst_121 = arith.constant 0.000000e+00 : f32
    %137 = vector.broadcast %cst_121 : f32 to vector<16x128xf32>
    %138 = arith.minimumf %134, %137 : vector<16x128xf32>
    %139 = math.exp %138 : vector<16x128xf32>
    %cst_122 = arith.constant 1.000000e+00 : f32
    %140 = vector.broadcast %cst_122 : f32 to vector<16x128xf32>
    %141 = arith.subf %139, %140 : vector<16x128xf32>
    %142 = arith.select %136, %134, %141 : vector<16x128xi1>, vector<16x128xf32>
    %143 = vector.extract_strided_slice %142 {offsets = [0, 0], sizes = [8, 128], strides = [1, 1]} : vector<16x128xf32> to vector<8x128xf32>
    %144 = arith.addf %129, %143 : vector<8x128xf32>
    %145 = vector.extract_strided_slice %142 {offsets = [8, 0], sizes = [8, 128], strides = [1, 1]} : vector<16x128xf32> to vector<8x128xf32>
    %146 = arith.addf %144, %145 : vector<8x128xf32>
    %cst_123 = arith.constant 5.000000e-01 : f32
    %147 = vector.broadcast %cst_123 : f32 to vector<8x128xf32>
    %148 = arith.mulf %146, %147 : vector<8x128xf32>
    %c0_124 = arith.constant 0 : index
    %c0_125 = arith.constant 0 : index
    %149 = vector.load %arg12[%c0_124, %c0_125] : memref<8x128xf32, #tpu.memory_space<vmem>>, vector<8x128xf32>
    tpu.vector_store %arg12[%c0_124, %c0_125], %148 {strides = array<i32>} : memref<8x128xf32, #tpu.memory_space<vmem>>, vector<8x128xf32>,
    return
  }
  func.func @transform_0(%arg0: i32) -> (i32, i32) {
    %c0_i32 = arith.constant 0 : i32
    %c0_i32_0 = arith.constant 0 : i32
    return %arg0, %c0_i32 : i32, i32
  }
  func.func @transform_1(%arg0: i32) -> (i32, i32) {
    %c0_i32 = arith.constant 0 : i32
    %c0_i32_0 = arith.constant 0 : i32
    %c0_i32_1 = arith.constant 0 : i32
    return %c0_i32, %c0_i32_0 : i32, i32
  }
  func.func @transform_2(%arg0: i32) -> (i32, i32) {
    %c0_i32 = arith.constant 0 : i32
    %c0_i32_0 = arith.constant 0 : i32
    %c0_i32_1 = arith.constant 0 : i32
    return %c0_i32, %c0_i32_0 : i32, i32
  }
  func.func @transform_3(%arg0: i32) -> (i32, i32) {
    %c0_i32 = arith.constant 0 : i32
    %c0_i32_0 = arith.constant 0 : i32
    %c0_i32_1 = arith.constant 0 : i32
    return %c0_i32, %c0_i32_0 : i32, i32
  }
  func.func @transform_4(%arg0: i32) -> (i32, i32) {
    %c0_i32 = arith.constant 0 : i32
    %c0_i32_0 = arith.constant 0 : i32
    %c0_i32_1 = arith.constant 0 : i32
    return %c0_i32, %c0_i32_0 : i32, i32
  }
  func.func @transform_5(%arg0: i32) -> (i32, i32) {
    %c0_i32 = arith.constant 0 : i32
    %c0_i32_0 = arith.constant 0 : i32
    %c0_i32_1 = arith.constant 0 : i32
    return %c0_i32, %c0_i32_0 : i32, i32
  }
  func.func @transform_6(%arg0: i32) -> (i32, i32) {
    %c0_i32 = arith.constant 0 : i32
    %c0_i32_0 = arith.constant 0 : i32
    %c0_i32_1 = arith.constant 0 : i32
    return %c0_i32, %c0_i32_0 : i32, i32
  }
  func.func @transform_7(%arg0: i32) -> (i32, i32) {
    %c0_i32 = arith.constant 0 : i32
    %c0_i32_0 = arith.constant 0 : i32
    %c0_i32_1 = arith.constant 0 : i32
    return %c0_i32, %c0_i32_0 : i32, i32
  }
  func.func @transform_8(%arg0: i32) -> (i32, i32) {
    %c0_i32 = arith.constant 0 : i32
    %c0_i32_0 = arith.constant 0 : i32
    %c0_i32_1 = arith.constant 0 : i32
    return %c0_i32, %c0_i32_0 : i32, i32
  }
  func.func @transform_9(%arg0: i32) -> (i32, i32) {
    %c0_i32 = arith.constant 0 : i32
    %c0_i32_0 = arith.constant 0 : i32
    %c0_i32_1 = arith.constant 0 : i32
    return %c0_i32, %c0_i32_0 : i32, i32
  }
  func.func @transform_10(%arg0: i32) -> (i32, i32) {
    %c0_i32 = arith.constant 0 : i32
    %c0_i32_0 = arith.constant 0 : i32
    %c0_i32_1 = arith.constant 0 : i32
    return %c0_i32, %c0_i32_0 : i32, i32
  }
  func.func @transform_11(%arg0: i32) -> (i32, i32) {
    %c0_i32 = arith.constant 0 : i32
    %c0_i32_0 = arith.constant 0 : i32
    return %arg0, %c0_i32 : i32, i32
  }
}

</mosaic_0001>

<bundles_post_ra>
// kernel: patch_embedding_forward.1
= control target key start
LH: loop header
LB: loop body
LE: loop exit
PB: predicated region body
PF: predicated region fallthrough
CT: control target
= control target key end

     0   :  { %s1601_s17 = smov 0   ;;  %s1870_s0 = inlined_call_operand.vmem [shape: bf16[16,128], index: 0, kind: input, shape index: {}]   ;;  %s1871_s1 = inlined_call_operand.vmem [shape: bf16[8,4], index: 1, kind: input, shape index: {}]   ;;  %s1872_s2 = inlined_call_operand.vmem [shape: f32[1,4], index: 2, kind: input, shape index: {}]   ;;  %s1873_s3 = inlined_call_operand.vmem [shape: f32[1,4], index: 3, kind: input, shape index: {}]   ;;  %s1874_s4 = inlined_call_operand.vmem [shape: f32[1,4], index: 4, kind: input, shape index: {}]   ;;  %s1875_s5 = inlined_call_operand.vmem [shape: bf16[16,8], index: 5, kind: input, shape index: {}]   ;;  %s1876_s6 = inlined_call_operand.vmem [shape: f32[1,8], index: 6, kind: input, shape index: {}]   ;;  %s1877_s7 = inlined_call_operand.vmem [shape: f32[1,8], index: 7, kind: input, shape index: {}]   ;;  %s1878_s8 = inlined_call_operand.vmem [shape: f32[1,8], index: 8, kind: input, shape index: {}]   ;;  %s1879_s9 = inlined_call_operand.vmem [shape: bf16[16,128], index: 9, kind: input, shape index: {}]   ;;  %s1880_s10 = inlined_call_operand.vmem [shape: f32[1,128], index: 10, kind: input, shape index: {}]   ;;  %s1881_s11 = inlined_call_operand.vmem [shape: f32[16,128], index: 11, kind: output, shape index: {}]  }
   0x1 LB: > { %s1228_s18 = sadd.s32 4294967295, %s1506_s17   ;;  %p1232_p0 = scmp.ge.s32.totalorder %s1506_s17, 1  ;;  %s1506_s17 = sphi %s1601_s17, %s21_s17  }
   0x2   : > { %p336_p1 = scmp.lt.s32.totalorder %s1506_s17, 3 }
   0x4   : > { %p337_p2 = pnand %p1232_p0, %p336_p1 }
   0x5   : > { %p374_p3 = scmp.lt.s32.totalorder (!%p337_p2), %s1228_s18, 1  ;;  %s1510_s25 = smov (!%p337_p2), 124  }
   0x6   : > { %340 = sbr.rel (%p337_p2) target bundleno = 1609 (0x649), region = 64  ;;  %s1511_s26 = smov (!%p337_p2), 116  }
   0x7   : > { %s1512_s27 = smov (!%p337_p2), 120   ;;  %s1513_s28 = smov (!%p337_p2), 112  }
   0x8   : > { %s1514_s29 = smov (!%p337_p2), 108   ;;  %s1515_s30 = smov (!%p337_p2), 104  }
   0x9   : > { %s1516_s12 = smov (!%p337_p2), 100   ;;  %s1517_s13 = smov (!%p337_p2), 96  }
   0xa   : > { %s1518_s14 = smov (!%p337_p2), 92   ;;  %s1519_s15 = smov (!%p337_p2), 88  }
   0xb   : > { %v383_v0 = vld [vmem:[%s1871_s1] sm:$0xf]  ;;  %vm471_vm0 = vcmask 1043456   ;;  %v1508_v1 = vmov 0.0   ;;  %s1883_s18 = smov (!%p374_p3, %s1228_s18), 1  ;;  %vm1509_vm1 = vmmov 0  }
   0xc   : > { %1346 = vmatprep.subr.bf16.mxu0 %v1508_v1  ;;  %v519_v2 = vsel %vm471_vm0, %v383_v0, 0  ;;  %1404 = vmatprep.subr.bf16.mxu1 %v1508_v1  ;;  %s1233_s21 = sshll.u32 %s1883_s18, 2  ;;  %s1520_s16 = smov 84   ;;  %vm498_vm2 = vcmask 64512   ;;  %v1670_v29 = vld [vmem:[%s1872_s2] ss:$0 sm:$0xff] }
   0xd   : > { %1347 = vmatpush3.bf16.msra.mxu0 %v519_v2  ;;  %1348 = vmatprep.mubr.msk.bf16.mxu0 %vm1509_vm1, %v1508_v1  ;;  %s377_s24 = scalar_lea.vmem %s1870_s0, %s1233_s21  ;;  %s1521_s19 = smov 72   ;;  %v1688_v54 = vld [vmem:[%s1873_s3] ss:$0 sm:$0xff] }
   0xe   : > { %1405 = vmatpush3.bf16.msra.mxu1 %v519_v2  ;;  %1376 = vmatprep.mubr.msk.bf16.mxu1 %vm1509_vm1, %v1508_v1  ;;  %v437_v3 = vld [vmem:[%s377_s24] sm:$0xf]  ;;  %s1522_s20 = smov 68   ;;  %s1523_s21 = smov 80  }
   0xf   : > { %1384 = vmatprep.subr.bf16.mxu1 %v1508_v1  ;;  %v1242_v4 = vcombine.low %v437_v3, %v437_v3  ;;  %s1524_s22 = smov 64   ;;  %s1525_s23 = smov 76   ;;  %v1698_v62 = vld [vmem:[%s1874_s4] ss:$0 sm:$0xff] }
  0x10   : > { %s1529_s24 = smov 28  }
  0x11   : > { %441 = vrot.lane.b32.xlu0 %v1242_v4, %s1510_s25  ;;  %445 = vrot.lane.b32.xlu1 %v1242_v4, %s1511_s26  ;;  %s1530_s26 = smov 36  }
  0x15   : > { %443 = vrot.lane.b32.xlu0 %v1242_v4, %s1512_s27  ;;  %447 = vrot.lane.b32.xlu1 %v1242_v4, %s1513_s28 }
  0x19   : > { %449 = vrot.lane.b32.xlu0 %v1242_v4, %s1514_s29  ;;  %451 = vrot.lane.b32.xlu1 %v1242_v4, %s1515_s30  ;;  %s1531_s29 = smov 16   ;;  %s1532_s30 = smov 24  }
  0x1d   : > { %453 = vrot.lane.b32.xlu0 %v1242_v4, %s1516_s12  ;;  %455 = vrot.lane.b32.xlu1 %v1242_v4, %s1517_s13  ;;  %s1533_s12 = smov 44  }
  0x21   : > { %457 = vrot.lane.b32.xlu0 %v1242_v4, %s1518_s14  ;;  %459 = vrot.lane.b32.xlu1 %v1242_v4, %s1519_s15  ;;  %s1526_s15 = smov 8   ;;  %s1534_s14 = smov 32  }
  0x25   : > { %461 = vrot.lane.b32.xlu0 %v1242_v4, %s1520_s16  ;;  %467 = vrot.lane.b32.xlu1 %v1242_v4, %s1521_s19  ;;  %s1527_s16 = smov 12  }
  0x29   : > { %469 = vrot.lane.b32.xlu0 %v1242_v4, %s1522_s20  ;;  %463 = vrot.lane.b32.xlu1 %v1242_v4, %s1523_s21 }
  0x2d   : > { %496 = vrot.lane.b32.xlu1 %v1242_v4, %s1524_s22  ;;  %465 = vrot.lane.b32.xlu0 %v1242_v4, %s1525_s23  ;;  %s1528_s23 = smov 20  }
  0x83   : > { %v442_v5 = vpop.permute.xlu0 %441  ;;  %v446_v6 = vpop.permute.xlu1 %445 }
  0x84   : > { %v474_v7 = vsel %vm471_vm0, %v437_v3, %v442_v5 }
  0x85   : > { %1349 = vmatmul.mubr.msk.bf16.vlgmr.msra.gmra.mxu0 %vm498_vm2, %v474_v7 }
  0x86   : > { %1352 = vmatprep.mubr.msk.bf16.mxu0 %vm1509_vm1, %v1508_v1 }
  0x87   : > { %v444_v8 = vpop.permute.xlu0 %443  ;;  %v448_v9 = vpop.permute.xlu1 %447 }
  0x88   : > { %v477_v10 = vsel %vm471_vm0, %v444_v8, %v446_v6 }
  0x8b   : > { %v450_v11 = vpop.permute.xlu0 %449  ;;  %v452_v12 = vpop.permute.xlu1 %451 }
  0x8c   : > { %v480_v17 = vsel %vm471_vm0, %v448_v9, %v450_v11 }
  0x8d   : > { %1353 = vmatmul.mubr.msk.bf16.gmra.mxu0 %vm498_vm2, %v477_v10 }
  0x8e   : > { %1356 = vmatprep.mubr.msk.bf16.mxu0 %vm1509_vm1, %v1508_v1 }
  0x8f   : > { %v454_v13 = vpop.permute.xlu0 %453  ;;  %v456_v14 = vpop.permute.xlu1 %455 }
  0x90   : > { %v483_v21 = vsel %vm471_vm0, %v452_v12, %v454_v13 }
  0x93   : > { %v458_v15 = vpop.permute.xlu0 %457  ;;  %v460_v16 = vpop.permute.xlu1 %459 }
  0x94   : > { %v486_v25 = vsel %vm471_vm0, %v456_v14, %v458_v15 }
  0x95   : > { %1357 = vmatmul.mubr.msk.bf16.gmra.mxu0 %vm498_vm2, %v480_v17 }
  0x96   : > { %1360 = vmatprep.mubr.msk.bf16.mxu0 %vm1509_vm1, %v1508_v1 }
  0x97   : > { %v462_v18 = vpop.permute.xlu0 %461  ;;  %v468_v19 = vpop.permute.xlu1 %467 }
  0x98   : > { %v489_v26 = vsel %vm471_vm0, %v460_v16, %v462_v18 }
  0x9b   : > { %v470_v20 = vpop.permute.xlu0 %469  ;;  %v464_v23 = vpop.permute.xlu1 %463 }
  0x9c   : > { %v495_v22 = vsel %vm471_vm0, %v468_v19, %v470_v20 }
  0x9d   : > { %1361 = vmatmul.mubr.msk.bf16.gmra.mxu0 %vm498_vm2, %v483_v21  ;;  %1377 = vmatmul.mubr.msk.bf16.vlgmr.msra.gmra.mxu1 %vm498_vm2, %v495_v22 }
  0x9e   : > { %1364 = vmatprep.mubr.msk.bf16.mxu0 %vm1509_vm1, %v1508_v1  ;;  %1380 = vmatprep.mubr.msk.bf16.mxu1 %vm1509_vm1, %v1508_v1 }
  0x9f   : > { %v497_v24 = vpop.permute.xlu1 %496  ;;  %v466_v27 = vpop.permute.xlu0 %465 }
  0xa0   : > { %v492_v28 = vsel %vm471_vm0, %v464_v23, %v466_v27 }
  0xa5   : > { %1365 = vmatmul.mubr.msk.bf16.gmra.mxu0 %vm498_vm2, %v486_v25  ;;  %1381 = vmatmul.mubr.msk.bf16.gmra.mxu1 %vm498_vm2, %v497_v24 }
  0xa6   : > { %1368 = vmatprep.mubr.msk.bf16.mxu0 %vm1509_vm1, %v1508_v1  ;;  %1386 = vmatprep.mubr.msk.bf16.mxu1 %vm1509_vm1, %v1508_v1 }
  0xad   : > { %1369 = vmatmul.mubr.msk.bf16.gmra.mxu0 %vm498_vm2, %v489_v26 }
  0xae   : > { %1372 = vmatprep.mubr.msk.bf16.mxu0 %vm1509_vm1, %v1508_v1 }
  0xb5   : > { %1373 = vmatmul.mubr.msk.bf16.gmra.mxu0 %vm498_vm2, %v492_v28 }
 0x145   : > { %v555_v30 = vpop.f32.mrf.mxu0 }
 0x146   : > { %v556_v31 = vadd.f32 %v1670_v29, %v555_v30 }
 0x147   : > { %v1350_v32 = vpop.f32.mrf.mxu0 }
 0x148   : > { %v642_v33 = vmin.f32 %v556_v31, 0.0  ;;  %vm625_vm3 = vcmp.gt.f32.partialorder %v556_v31, 0.0 }
 0x149   : > { %v558_v34 = vpop.f32.mrf.mxu0 }
 0x14a   : > { %v659_v35 = vmul.f32 1.442695, %v642_v33  ;;  %v559_v36 = vadd.f32 %v1670_v29, %v558_v34 }
 0x14b   : > { %v1351_v37 = vpop.f32.mrf.mxu0 }
 0x14c   : > { %1452 = vpow2.f32 %v659_v35  ;;  %v643_v38 = vmin.f32 %v559_v36, 0.0  ;;  %vm626_vm4 = vcmp.gt.f32.partialorder %v559_v36, 0.0 }
 0x14d   : > { %v563_v39 = vpop.f32.mrf.mxu0 }
 0x14e   : > { %v661_v40 = vmul.f32 1.442695, %v643_v38  ;;  %v1678_v44 = vadd.f32 %v1670_v29, %v563_v39 }
 0x14f   : > { %v1354_v41 = vpop.f32.mrf.mxu0 }
 0x150   : > { %1454 = vpow2.f32 %v661_v40  ;;  %v644_v49 = vmin.f32 %v1678_v44, 0.0  ;;  %vm627_vm7 = vcmp.gt.f32.partialorder %v1678_v44, 0.0 }
 0x151   : > { %v566_v42 = vpop.f32.mrf.mxu0 }
 0x152   : > { %v1675_v43 = vadd.f32 %v1670_v29, %v566_v42  ;;  %v663_v57 = vmul.f32 1.442695, %v644_v49 }
 0x153   : > { %v1355_v45 = vpop.f32.mrf.mxu0 }
 0x154   : > { %v645_v46 = vmin.f32 %v1675_v43, 0.0  ;;  %vm628_vm5 = vcmp.gt.f32.partialorder %v1675_v43, 0.0 }
 0x155   : > { %v571_v47 = vpop.f32.mrf.mxu0 }
 0x156   : > { %v665_v48 = vmul.f32 1.442695, %v645_v46  ;;  %v1683_v50 = vadd.f32 %v1670_v29, %v571_v47 }
 0x157   : > { %v1358_v51 = vpop.f32.mrf.mxu0 }
 0x158   : > { %1456 = vpow2.f32 %v665_v48  ;;  %v646_v58 = vmin.f32 %v1683_v50, 0.0  ;;  %vm629_vm9 = vcmp.gt.f32.partialorder %v1683_v50, 0.0 }
 0x159   : > { %v1453_v52 = vpop.eup %1452  ;;  %v574_v53 = vpop.f32.mrf.mxu0  ;;  %1458 = vpow2.f32 %v663_v57 }
 0x15a   : > { %v1252_v55 = vadd.f32 -1.0, %v1453_v52  ;;  %v1691_v56 = vadd.f32 %v1670_v29, %v574_v53  ;;  %v667_v8 = vmul.f32 1.442695, %v646_v58 }
 0x15b   : > { %v1359_v59 = vpop.f32.mrf.mxu0 }
 0x15c   : > { %v710_v60 = vsel %vm625_vm3, %v556_v31, %v1252_v55  ;;  %v647_v61 = vmin.f32 %v1691_v56, 0.0  ;;  %vm630_vm6 = vcmp.gt.f32.partialorder %v1691_v56, 0.0 }
 0x15d   : > { %v1455_v63 = vpop.eup %1454  ;;  %v727_v0 = vmul.f32 %v1688_v54, %v710_v60  ;;  %v579_v2 = vpop.f32.mrf.mxu0 }
 0x15e   : > { %v611_v3 = vpop.f32.mrf.mxu1  ;;  %v1253_v4 = vadd.f32 -1.0, %v1455_v63  ;;  %v669_v5 = vmul.f32 1.442695, %v647_v61  ;;  %v1702_v6 = vadd.f32 %v1670_v29, %v579_v2 }
 0x15f   : > { %v1705_v7 = vadd.f32 %v1670_v29, %v611_v3  ;;  %v1362_v9 = vpop.f32.mrf.mxu0  ;;  %v744_v11 = vadd.f32 %v1698_v62, %v727_v0 }
 0x160   : > { %v1378_v10 = vpop.f32.mrf.mxu1  ;;  %v711_v12 = vsel %vm626_vm4, %v559_v36, %v1253_v4  ;;  %1460 = vpow2.f32 %v669_v5  ;;  %v648_v13 = vmin.f32 %v1702_v6, 0.0  ;;  %vm631_vm11 = vcmp.gt.f32.partialorder %v1702_v6, 0.0 }
 0x161   : > { %v728_v14 = vmul.f32 %v1688_v54, %v711_v12  ;;  %v656_v15 = vmin.f32 %v1705_v7, 0.0  ;;  %v582_v16 = vpop.f32.mrf.mxu0  ;;  %v1308_v18 = vpack.c.bf16 %v744_v11, %v744_v11  ;;  %1462 = vpow2.f32 %v667_v8 }
 0x162   : > { %v614_v17 = vpop.f32.mrf.mxu1  ;;  %v1712_v19 = vadd.f32 %v1670_v29, %v582_v16  ;;  %v671_v20 = vmul.f32 1.442695, %v648_v13  ;;  %vm639_vm8 = vcmp.gt.f32.partialorder %v1705_v7, 0.0 }
 0x163   : > { %v687_v21 = vmul.f32 1.442695, %v656_v15  ;;  %773 = vrot.lane.b32.xlu0 %v1308_v18, %s1526_s15  ;;  %v1363_v22 = vpop.f32.mrf.mxu0  ;;  %v745_v24 = vadd.f32 %v1698_v62, %v728_v14  ;;  %v1733_v52 = vadd.f32 %v1670_v29, %v614_v17 }
 0x164   : > { %v1379_v23 = vpop.f32.mrf.mxu1  ;;  %v649_v25 = vmin.f32 %v1712_v19, 0.0  ;;  %vm632_vm10 = vcmp.gt.f32.partialorder %v1712_v19, 0.0 }
 0x165   : > { %v1457_v26 = vpop.eup %1456  ;;  %1464 = vpow2.f32 %v687_v21  ;;  %v587_v27 = vpop.f32.mrf.mxu0  ;;  %v1309_v33 = vpack.c.bf16 %v745_v24, %v745_v24  ;;  %v657_v5 = vmin.f32 %v1733_v52, 0.0  ;;  %vm640_vm4 = vcmp.gt.f32.partialorder %v1733_v52, 0.0 }
 0x166   : > { %v619_v28 = vpop.f32.mrf.mxu1  ;;  %v1255_v30 = vadd.f32 -1.0, %v1457_v26  ;;  %v673_v31 = vmul.f32 1.442695, %v649_v25  ;;  %v1718_v32 = vadd.f32 %v1670_v29, %v587_v27  ;;  %1466 = vpow2.f32 %v671_v20  ;;  %v1459_v48 = vpop.eup %1458 }
 0x167   : > { %v1366_v34 = vpop.f32.mrf.mxu0  ;;  %780 = vrot.lane.b32.xlu1 %v1309_v33, %s1527_s16  ;;  %v1728_v45 = vadd.f32 %v1670_v29, %v619_v28  ;;  %v1254_v0 = vadd.f32 -1.0, %v1459_v48  ;;  %v689_v22 = vmul.f32 1.442695, %v657_v5  ;;  %s1535_s16 = smov 40  }
 0x168   : > { %v1382_v35 = vpop.f32.mrf.mxu1  ;;  %v713_v36 = vsel %vm628_vm5, %v1675_v43, %v1255_v30  ;;  %1468 = vpow2.f32 %v673_v31  ;;  %v650_v37 = vmin.f32 %v1718_v32, 0.0  ;;  %vm633_vm12 = vcmp.gt.f32.partialorder %v1718_v32, 0.0 }
 0x169   : > { %v730_v38 = vmul.f32 %v1688_v54, %v713_v36  ;;  %v590_v39 = vpop.f32.mrf.mxu0  ;;  %v658_v60 = vmin.f32 %v1728_v45, 0.0  ;;  %v712_v17 = vsel %vm627_vm7, %v1678_v44, %v1254_v0  ;;  %vm641_vm2 = vcmp.gt.f32.partialorder %v1728_v45, 0.0 }
 0x16a   : > { %v622_v40 = vpop.f32.mrf.mxu1  ;;  %v675_v41 = vmul.f32 1.442695, %v650_v37  ;;  %v1725_v42 = vadd.f32 %v1670_v29, %v590_v39  ;;  %v729_v44 = vmul.f32 %v1688_v54, %v712_v17  ;;  %vm783_vm7 = vcmask 126048  }
 0x16b   : > { %v1367_v46 = vpop.f32.mrf.mxu0  ;;  %v747_v47 = vadd.f32 %v1698_v62, %v730_v38  ;;  %v691_v14 = vmul.f32 1.442695, %v658_v60 }
 0x16c   : > { %v1383_v43 = vpop.f32.mrf.mxu1  ;;  %1470 = vpow2.f32 %v675_v41  ;;  %v651_v49 = vmin.f32 %v1725_v42, 0.0  ;;  %vm634_vm13 = vcmp.gt.f32.partialorder %v1725_v42, 0.0 }
 0x16d   : > { %v1461_v51 = vpop.eup %1460  ;;  %v595_v53 = vpop.f32.mrf.mxu0  ;;  %v1311_v55 = vpack.c.bf16 %v747_v47, %v747_v47  ;;  %v746_v47 = vadd.f32 %v1698_v62, %v729_v44 }
 0x16e   : > { %v1257_v57 = vadd.f32 -1.0, %v1461_v51  ;;  %v677_v58 = vmul.f32 1.442695, %v651_v49  ;;  %v1736_v59 = vadd.f32 %v1670_v29, %v595_v53  ;;  %v1463_v63 = vpop.eup %1462 }
 0x16f   : > { %795 = vrot.lane.b32.xlu1 %v1311_v55, %s1528_s23  ;;  %v1370_v61 = vpop.f32.mrf.mxu0  ;;  %v1256_v12 = vadd.f32 -1.0, %v1463_v63  ;;  %s1536_s23 = smov 52  }
 0x170   : > { %v715_v2 = vsel %vm630_vm6, %v1691_v56, %v1257_v57  ;;  %1472 = vpow2.f32 %v677_v58  ;;  %v652_v3 = vmin.f32 %v1736_v59, 0.0  ;;  %v1310_v58 = vpack.c.bf16 %v746_v47, %v746_v47 }
 0x171   : > { %v732_v4 = vmul.f32 %v1688_v54, %v715_v2  ;;  %v598_v8 = vpop.f32.mrf.mxu0  ;;  %v714_v30 = vsel %vm629_vm9, %v1683_v50, %v1256_v12  ;;  %vm635_vm14 = vcmp.gt.f32.partialorder %v1736_v59, 0.0  ;;  %vm776_vm6 = vcmask 93248  }
 0x172   : > { %v1465_v9 = vpop.eup %1464  ;;  %v679_v10 = vmul.f32 1.442695, %v652_v3  ;;  %v1746_v11 = vadd.f32 %v1670_v29, %v598_v8  ;;  %v731_v40 = vmul.f32 %v1688_v54, %v714_v30  ;;  %vm798_vm9 = vcmask 191648  }
 0x173   : > { %v1266_v13 = vadd.f32 -1.0, %v1465_v9  ;;  %v1371_v15 = vpop.f32.mrf.mxu0  ;;  %v749_v56 = vadd.f32 %v1698_v62, %v732_v4  ;;  %v1467_v16 = vpop.eup %1466 }
 0x174   : > { %1474 = vpow2.f32 %v679_v10  ;;  %v653_v18 = vmin.f32 %v1746_v11, 0.0  ;;  %v1258_v31 = vadd.f32 -1.0, %v1467_v16  ;;  %vm636_vm15 = vcmp.gt.f32.partialorder %v1746_v11, 0.0 }
 0x175   : > { %v1469_v20 = vpop.eup %1468  ;;  %v724_v21 = vsel %vm639_vm8, %v1705_v7, %v1266_v13  ;;  %v603_v23 = vpop.f32.mrf.mxu0  ;;  %v1313_v24 = vpack.c.bf16 %v749_v56, %v749_v56  ;;  %1476 = vpow2.f32 %v691_v14  ;;  %vm791_vm8 = vcmask 158848  }
 0x176   : > { %v741_v25 = vmul.f32 %v1688_v54, %v724_v21  ;;  %v1259_v26 = vadd.f32 -1.0, %v1469_v20  ;;  %v681_v27 = vmul.f32 1.442695, %v653_v18  ;;  %v1756_v28 = vadd.f32 %v1670_v29, %v603_v23 }
 0x177   : > { %810 = vrot.lane.b32.xlu1 %v1313_v24, %s1529_s24  ;;  %v1374_v7 = vpop.f32.mrf.mxu0  ;;  %v716_v43 = vsel %vm631_vm11, %v1702_v6, %v1258_v31  ;;  %v748_v6 = vadd.f32 %v1698_v62, %v731_v40  ;;  %s1537_s24 = smov 48   ;;  %vm813_vm11 = vcmask 257248  }
 0x178   : > { %v717_v33 = vsel %vm632_vm10, %v1712_v19, %v1259_v26  ;;  %1478 = vpow2.f32 %v681_v27  ;;  %v654_v34 = vmin.f32 %v1756_v28, 0.0  ;;  %v758_v38 = vadd.f32 %v1698_v62, %v741_v25 }
 0x179   : > { %v1471_v35 = vpop.eup %1470  ;;  %v734_v36 = vmul.f32 %v1688_v54, %v717_v33  ;;  %v606_v37 = vpop.f32.mrf.mxu0  ;;  %1480 = vpow2.f32 %v689_v22  ;;  %v733_v57 = vmul.f32 %v1688_v54, %v716_v43  ;;  %v1312_v4 = vpack.c.bf16 %v748_v6, %v748_v6 }
 0x17a   : > { %v683_v50 = vmul.f32 1.442695, %v654_v34  ;;  %v1767_v39 = vadd.f32 %v1670_v29, %v606_v37  ;;  %v1322_v41 = vpack.c.bf16 %v758_v38, %v758_v38  ;;  %v1260_v48 = vadd.f32 -1.0, %v1471_v35 }
 0x17b   : > { %v1375_v19 = vpop.f32.mrf.mxu0  ;;  %v751_v46 = vadd.f32 %v1698_v62, %v734_v36  ;;  %v750_v8 = vadd.f32 %v1698_v62, %v733_v57  ;;  %vm637_vm3 = vcmp.gt.f32.partialorder %v1756_v28, 0.0  ;;  %vm806_vm10 = vcmask 224448  }
 0x17c   : > { %1482 = vpow2.f32 %v683_v50  ;;  %v655_v49 = vmin.f32 %v1767_v39, 0.0  ;;  %878 = vrot.lane.b32.xlu0 %v1322_v41, %s1524_s22  ;;  %v718_v60 = vsel %vm633_vm12, %v1718_v32, %v1260_v48  ;;  %vm638_vm5 = vcmp.gt.f32.partialorder %v1767_v39, 0.0 }
 0x17d   : > { %v1473_v51 = vpop.eup %1472  ;;  %v1315_v53 = vpack.c.bf16 %v751_v46, %v751_v46  ;;  %v735_v3 = vmul.f32 %v1688_v54, %v718_v60  ;;  %v1314_v15 = vpack.c.bf16 %v750_v8, %v750_v8  ;;  %vm821_vm12 = vcmask 290048  }
 0x17e   : > { %v1261_v29 = vadd.f32 -1.0, %v1473_v51  ;;  %v685_v55 = vmul.f32 1.442695, %v655_v49 }
 0x17f   : > { %825 = vrot.lane.b32.xlu1 %v1315_v53, %s1530_s26  ;;  %v752_v56 = vadd.f32 %v1698_v62, %v735_v3  ;;  %s1538_s26 = smov 56  }
 0x180   : > { %v719_v61 = vsel %vm634_vm13, %v1725_v42, %v1261_v29  ;;  %1484 = vpow2.f32 %v685_v55  ;;  %788 = vrot.lane.b32.xlu0 %v1310_v58, %s1531_s29  ;;  %vm828_vm13 = vcmask 322848  }
 0x181   : > { %v1475_v63 = vpop.eup %1474  ;;  %v736_v0 = vmul.f32 %v1688_v54, %v719_v61  ;;  %v1316_v22 = vpack.c.bf16 %v752_v56, %v752_v56 }
 0x182   : > { %v1262_v2 = vadd.f32 -1.0, %v1475_v63  ;;  %v1477_v32 = vpop.eup %1476  ;;  %v1449_v63 = vld [vmem:[%s1875_s5] sm:$0xff]  }
 0x183   : > { %v753_v5 = vadd.f32 %v1698_v62, %v736_v0  ;;  %v1268_v16 = vadd.f32 -1.0, %v1477_v32  ;;  %1385 = vmatpush3.bf16.msra.mxu1 %v1449_v63 }
 0x184   : > { %v720_v42 = vsel %vm635_vm14, %v1736_v59, %v1262_v2  ;;  %803 = vrot.lane.b32.xlu0 %v1312_v4, %s1532_s30  ;;  %vm836_vm14 = vcmask 355648   ;;  %1398 = vmatprep.subr.bf16.mxu1 %v1508_v1 }
 0x185   : > { %v1479_v9 = vpop.eup %1478  ;;  %v1317_v10 = vpack.c.bf16 %v753_v5, %v753_v5  ;;  %v737_v14 = vmul.f32 %v1688_v54, %v720_v42  ;;  %v726_v25 = vsel %vm641_vm2, %v1728_v45, %v1268_v16  ;;  %vm851_vm2 = vcmask 421248  }
 0x186   : > { %v1263_v12 = vadd.f32 -1.0, %v1479_v9  ;;  %v1481_v13 = vpop.eup %1480  ;;  %v743_v31 = vmul.f32 %v1688_v54, %v726_v25 }
 0x187   : > { %840 = vrot.lane.b32.xlu1 %v1317_v10, %s1533_s12  ;;  %v1267_v20 = vadd.f32 -1.0, %v1481_v13  ;;  %v754_v24 = vadd.f32 %v1698_v62, %v737_v14  ;;  %s1539_s12 = smov 60   ;;  %v1238_v14 = vld [vmem:[%s1876_s6] ss:$0 sm:$0xff] }
 0x188   : > { %v721_v17 = vsel %vm636_vm15, %v1746_v11, %v1263_v12  ;;  %818 = vrot.lane.b32.xlu0 %v1314_v15, %s1534_s14  ;;  %vm843_vm15 = vcmask 388448  }
 0x189   : > { %v1483_v59 = vpop.eup %1482  ;;  %v738_v18 = vmul.f32 %v1688_v54, %v721_v17  ;;  %v725_v30 = vsel %vm640_vm4, %v1733_v52, %v1267_v20  ;;  %v1318_v45 = vpack.c.bf16 %v754_v24, %v754_v24  ;;  %v760_v52 = vadd.f32 %v1698_v62, %v743_v31 }
 0x18a   : > { %v1264_v21 = vadd.f32 -1.0, %v1483_v59  ;;  %v742_v34 = vmul.f32 %v1688_v54, %v725_v30  ;;  %vm866_vm4 = vcmask 486848  }
 0x18b   : > { %v755_v23 = vadd.f32 %v1698_v62, %v738_v18  ;;  %v1324_v40 = vpack.c.bf16 %v760_v52, %v760_v52  ;;  %v1239_v52 = vld [vmem:[%s1877_s7] ss:$0 sm:$0xff] }
 0x18c   : > { %v722_v11 = vsel %vm637_vm3, %v1756_v28, %v1264_v21  ;;  %833 = vrot.lane.b32.xlu0 %v1316_v22, %s1535_s16  ;;  %v759_v50 = vadd.f32 %v1698_v62, %v742_v34  ;;  %vm858_vm3 = vcmask 454048  }
 0x18d   : > { %v1485_v26 = vpop.eup %1484  ;;  %v739_v27 = vmul.f32 %v1688_v54, %v722_v11  ;;  %v1319_v44 = vpack.c.bf16 %v755_v23, %v755_v23 }
 0x18e   : > { %v1265_v7 = vadd.f32 -1.0, %v1485_v26 }
 0x18f   : > { %855 = vrot.lane.b32.xlu1 %v1319_v44, %s1536_s23  ;;  %v756_v28 = vadd.f32 %v1698_v62, %v739_v27 }
 0x190   : > { %v723_v33 = vsel %vm638_vm5, %v1767_v39, %v1265_v7  ;;  %848 = vrot.lane.b32.xlu0 %v1318_v45, %s1537_s24  ;;  %v1323_v39 = vpack.c.bf16 %v759_v50, %v759_v50  ;;  %vm873_vm5 = vcmask 519648  }
 0x191   : > { %v740_v35 = vmul.f32 %v1688_v54, %v723_v33  ;;  %v1320_v36 = vpack.c.bf16 %v756_v28, %v756_v28 }
 0x193   : > { %v757_v37 = vadd.f32 %v1698_v62, %v740_v35 }
 0x194   : > { %863 = vrot.lane.b32.xlu0 %v1320_v36, %s1538_s26 }
 0x195   : > { %v1321_v38 = vpack.c.bf16 %v757_v37, %v757_v37 }
 0x197   : > { %870 = vrot.lane.b32.xlu1 %v1321_v38, %s1539_s12 }
 0x198   : > { %893 = vrot.lane.b32.xlu0 %v1324_v40, %s1521_s19  ;;  %s1540_s19 = smov 4  }
 0x19b   : > { %885 = vrot.lane.b32.xlu1 %v1323_v39, %s1522_s20  ;;  %v1240_v39 = vld [vmem:[%s1878_s8] ss:$0 sm:$0xff] }
 0x1d5   : > { %v774_v54 = vpop.permute.xlu0 %773 }
 0x1d6   : > { %777 = vst.msk [vmem:[#allocation2] sm:$0xf] %vm776_vm6, %v774_v54  ;;  %vm881_vm6 = vcmask 552448  }
 0x1d9   : > { %v781_v41 = vpop.permute.xlu1 %780 }
 0x1da   : > { %784 = vst.msk [vmem:[#allocation2] sm:$0xf] %vm783_vm7, %v781_v41  ;;  %vm888_vm7 = vcmask 585248  }
 0x1e1   : > { %v796_v46 = vpop.permute.xlu1 %795 }
 0x1e9   : > { %v811_v62 = vpop.permute.xlu1 %810 }
 0x1ee   : > { %v879_v19 = vpop.permute.xlu0 %878 }
 0x1f1   : > { %v826_v48 = vpop.permute.xlu1 %825 }
 0x1f2   : > { %v789_v47 = vpop.permute.xlu0 %788 }
 0x1f3   : > { %792 = vst.msk [vmem:[#allocation2] sm:$0xf] %vm791_vm8, %v789_v47  ;;  %vm896_vm8 = vcmask 618048  }
 0x1f4   : > { %799 = vst.msk [vmem:[#allocation2] sm:$0xf] %vm798_vm9, %v796_v46  ;;  %vm903_vm9 = vcmask 27648  }
 0x1f6   : > { %v804_v43 = vpop.permute.xlu0 %803 }
 0x1f7   : > { %807 = vst.msk [vmem:[#allocation2] sm:$0xf] %vm806_vm10, %v804_v43  ;;  %vm908_vm10 = vcmask 650848  }
 0x1f8   : > { %814 = vst.msk [vmem:[#allocation2] sm:$0xf] %vm813_vm11, %v811_v62  ;;  %vm913_vm11 = vcmask 60448  }
 0x1f9   : > { %v841_v51 = vpop.permute.xlu1 %840 }
 0x1fa   : > { %v819_v49 = vpop.permute.xlu0 %818 }
 0x1fb   : > { %822 = vst.msk [vmem:[#allocation2] sm:$0xf] %vm821_vm12, %v819_v49  ;;  %vm918_vm12 = vcmask 683648  }
 0x1fc   : > { %829 = vst.msk [vmem:[#allocation2] sm:$0xf] %vm828_vm13, %v826_v48  ;;  %vm944_vm13 = vcmask 130048  }
 0x1fe   : > { %v834_v53 = vpop.permute.xlu0 %833 }
 0x1ff   : > { %837 = vst.msk [vmem:[#allocation2] sm:$0xf] %vm836_vm14, %v834_v53 }
 0x200   : > { %844 = vst.msk [vmem:[#allocation2] sm:$0xf] %vm843_vm15, %v841_v51 }
 0x201   : > { %v856_v29 = vpop.permute.xlu1 %855 }
 0x202   : > { %v849_v55 = vpop.permute.xlu0 %848 }
 0x203   : > { %852 = vst.msk [vmem:[#allocation2] sm:$0xf] %vm851_vm2, %v849_v55 }
 0x204   : > { %859 = vst.msk [vmem:[#allocation2] sm:$0xf] %vm858_vm3, %v856_v29 }
 0x206   : > { %v864_v57 = vpop.permute.xlu0 %863 }
 0x207   : > { %867 = vst.msk [vmem:[#allocation2] sm:$0xf] %vm866_vm4, %v864_v57  ;;  %vm1057_vm4 = vcmask 126016  }
 0x209   : > { %v871_v58 = vpop.permute.xlu1 %870 }
 0x20a   : > { %874 = vst.msk [vmem:[#allocation2] sm:$0xf] %vm873_vm5, %v871_v58  ;;  %v894_v60 = vpop.permute.xlu0 %893  ;;  %vm1064_vm5 = vcmask 191616  }
 0x20b   : > { %882 = vst.msk [vmem:[#allocation2] sm:$0xf] %vm881_vm6, %v879_v19  ;;  %vm1072_vm6 = vcmask 257216  }
 0x20d   : > { %v886_v6 = vpop.permute.xlu1 %885 }
 0x20e   : > { %889 = vst.msk [vmem:[#allocation2] sm:$0xf] %vm888_vm7, %v886_v6  ;;  %vm1079_vm7 = vcmask 322816  }
 0x20f   : > { %897 = vst.msk [vmem:[#allocation2] sm:$0xf] %vm896_vm8, %v894_v60  ;;  %vm1087_vm8 = vcmask 388416  }
 0x216   : > { %v898_v61 = vld [vmem:[#allocation2] sm:$0xf] }
 0x217   : > { %905 = vrot.lane.b32.xlu0 %v898_v61, %s1540_s19  ;;  %900 = vrot.lane.b32.xlu1 %v898_v61, %s1512_s27 }
 0x21b   : > { %915 = vrot.lane.b32.xlu0 %v898_v61, %s1526_s15  ;;  %910 = vrot.lane.b32.xlu1 %v898_v61, %s1510_s25 }
 0x289   : > { %v906_v0 = vpop.permute.xlu0 %905  ;;  %v901_v2 = vpop.permute.xlu1 %900 }
 0x28a   : > { %904 = vst.msk [vmem:[#allocation2] sm:$0xf] %vm903_vm9, %v901_v2  ;;  %vm1094_vm9 = vcmask 60416  }
 0x28b   : > { %909 = vst.msk [vmem:[#allocation2] sm:$0xf] %vm908_vm10, %v906_v0  ;;  %vm1099_vm10 = vcmask 454016  }
 0x28d   : > { %v916_v3 = vpop.permute.xlu0 %915  ;;  %v911_v4 = vpop.permute.xlu1 %910 }
 0x28e   : > { %914 = vst.msk [vmem:[#allocation2] sm:$0xf] %vm913_vm11, %v911_v4 }
 0x28f   : > { %919 = vst.msk [vmem:[#allocation2] sm:$0xf] %vm918_vm12, %v916_v3 }
 0x296   : > { %v920_v5 = vld [vmem:[#allocation2] sm:$0xf] }
 0x297   : > { %v1286_v8 = vcombine.low %v920_v5, %v920_v5 }
 0x299   : > { %926 = vrot.lane.b32.xlu0 %v1286_v8, %s1517_s13  ;;  %924 = vrot.lane.b32.xlu1 %v1286_v8, %s1513_s28 }
 0x29d   : > { %930 = vrot.lane.b32.xlu0 %v1286_v8, %s1524_s22  ;;  %928 = vrot.lane.b32.xlu1 %v1286_v8, %s1523_s21 }
 0x30b   : > { %v925_v32 = vpop.permute.xlu1 %924  ;;  %v927_v10 = vpop.permute.xlu0 %926 }
 0x30c   : > { %v934_v42 = vsel %vm471_vm0, %v920_v5, %v925_v32 }
 0x30d   : > { %1387 = vmatmul.mubr.msk.bf16.vlgmr.msra.gmra.mxu1 %vm944_vm13, %v934_v42 }
 0x30e   : > { %1390 = vmatprep.mubr.msk.bf16.mxu1 %vm1509_vm1, %v1508_v1 }
 0x30f   : > { %v929_v9 = vpop.permute.xlu1 %928  ;;  %v931_v13 = vpop.permute.xlu0 %930 }
 0x310   : > { %v937_v12 = vsel %vm471_vm0, %v927_v10, %v929_v9 }
 0x315   : > { %1391 = vmatmul.mubr.msk.bf16.gmra.mxu1 %vm944_vm13, %v937_v12 }
 0x316   : > { %1394 = vmatprep.mubr.msk.bf16.mxu1 %vm1509_vm1, %v1508_v1 }
 0x31d   : > { %1395 = vmatmul.mubr.msk.bf16.gmra.mxu1 %vm944_vm13, %v931_v13 }
 0x31e   : > { %1400 = vmatprep.mubr.msk.bf16.mxu1 %vm1509_vm1, %v1508_v1 }
 0x3cd   : > { %v986_v15 = vpop.f32.mrf.mxu1 }
 0x3ce   : > { %v987_v56 = vadd.f32 %v1238_v14, %v986_v15  ;;  %v1451_v15 = vld [vmem:[%s1879_s9] sm:$0xff]  }
 0x3cf   : > { %v1388_v16 = vpop.f32.mrf.mxu1  ;;  %1399 = vmatpush3.bf16.msra.mxu1 %v1451_v15 }
 0x3d0   : > { %v1013_v17 = vmin.f32 %v987_v56, 0.0  ;;  %vm1008_vm1 = vcmp.gt.f32.partialorder %v987_v56, 0.0 }
 0x3d1   : > { %v989_v59 = vpop.f32.mrf.mxu1 }
 0x3d2   : > { %v1018_v18 = vmul.f32 1.442695, %v1013_v17  ;;  %v990_v20 = vadd.f32 %v1238_v14, %v989_v59 }
 0x3d3   : > { %v1389_v21 = vpop.f32.mrf.mxu1 }
 0x3d4   : > { %1486 = vpow2.f32 %v1018_v18  ;;  %v1014_v22 = vmin.f32 %v990_v20, 0.0  ;;  %vm1009_vm14 = vcmp.gt.f32.partialorder %v990_v20, 0.0 }
 0x3d5   : > { %v994_v23 = vpop.f32.mrf.mxu1 }
 0x3d6   : > { %v1020_v24 = vmul.f32 1.442695, %v1014_v22  ;;  %v995_v25 = vadd.f32 %v1238_v14, %v994_v23  ;;  %v1241_v22 = vld [vmem:[%s1880_s10] ss:$0 sm:$0xff] }
 0x3d7   : > { %v1392_v11 = vpop.f32.mrf.mxu1 }
 0x3d8   : > { %1488 = vpow2.f32 %v1020_v24  ;;  %v1015_v1 = vmin.f32 %v995_v25, 0.0  ;;  %vm1010_vm15 = vcmp.gt.f32.partialorder %v995_v25, 0.0 }
 0x3d9   : > { %v997_v26 = vpop.f32.mrf.mxu1 }
 0x3da   : > { %v1022_v27 = vmul.f32 1.442695, %v1015_v1  ;;  %v998_v44 = vadd.f32 %v1238_v14, %v997_v26 }
 0x3db   : > { %v1393_v30 = vpop.f32.mrf.mxu1 }
 0x3dc   : > { %1490 = vpow2.f32 %v1022_v27  ;;  %v1016_v7 = vmin.f32 %v998_v44, 0.0  ;;  %vm1011_vm2 = vcmp.gt.f32.partialorder %v998_v44, 0.0 }
 0x3dd   : > { %v1002_v31 = vpop.f32.mrf.mxu1 }
 0x3de   : > { %v1024_v45 = vmul.f32 1.442695, %v1016_v7  ;;  %v1003_v28 = vadd.f32 %v1238_v14, %v1002_v31 }
 0x3df   : > { %v1396_v33 = vpop.f32.mrf.mxu1 }
 0x3e0   : > { %1492 = vpow2.f32 %v1024_v45  ;;  %v1017_v34 = vmin.f32 %v1003_v28, 0.0  ;;  %vm1012_vm3 = vcmp.gt.f32.partialorder %v1003_v28, 0.0 }
 0x3e1   : > { %v1487_v35 = vpop.eup %1486  ;;  %v1005_v36 = vpop.f32.mrf.mxu1 }
 0x3e2   : > { %v1291_v37 = vadd.f32 -1.0, %v1487_v35  ;;  %v1026_v38 = vmul.f32 1.442695, %v1017_v34 }
 0x3e3   : > { %v1397_v50 = vpop.f32.mrf.mxu1 }
 0x3e4   : > { %v1033_v40 = vsel %vm1008_vm1, %v987_v56, %v1291_v37  ;;  %1494 = vpow2.f32 %v1026_v38 }
 0x3e5   : > { %v1489_v54 = vpop.eup %1488  ;;  %v1038_v41 = vmul.f32 %v1239_v52, %v1033_v40 }
 0x3e6   : > { %v1292_v19 = vadd.f32 -1.0, %v1489_v54 }
 0x3e7   : > { %v1043_v46 = vadd.f32 %v1240_v39, %v1038_v41 }
 0x3e8   : > { %v1034_v47 = vsel %vm1009_vm14, %v990_v20, %v1292_v19 }
 0x3e9   : > { %v1491_v62 = vpop.eup %1490  ;;  %v1039_v43 = vmul.f32 %v1239_v52, %v1034_v47  ;;  %v1325_v48 = vpack.c.bf16 %v1043_v46, %v1043_v46 }
 0x3ea   : > { %v1293_v49 = vadd.f32 -1.0, %v1491_v62 }
 0x3eb   : > { %1054 = vrot.lane.b32.xlu1 %v1325_v48, %s1526_s15  ;;  %v1044_v51 = vadd.f32 %v1240_v39, %v1039_v43 }
 0x3ec   : > { %v1035_v53 = vsel %vm1010_vm15, %v995_v25, %v1293_v49 }
 0x3ed   : > { %v1493_v29 = vpop.eup %1492  ;;  %v1040_v55 = vmul.f32 %v1239_v52, %v1035_v53  ;;  %v1326_v57 = vpack.c.bf16 %v1044_v51, %v1044_v51 }
 0x3ee   : > { %v1294_v58 = vadd.f32 -1.0, %v1493_v29 }
 0x3ef   : > { %1061 = vrot.lane.b32.xlu0 %v1326_v57, %s1531_s29  ;;  %v1045_v6 = vadd.f32 %v1240_v39, %v1040_v55 }
 0x3f0   : > { %v1036_v60 = vsel %vm1011_vm2, %v998_v44, %v1294_v58 }
 0x3f1   : > { %v1495_v61 = vpop.eup %1494  ;;  %v1041_v63 = vmul.f32 %v1239_v52, %v1036_v60  ;;  %v1327_v0 = vpack.c.bf16 %v1045_v6, %v1045_v6 }
 0x3f2   : > { %v1295_v2 = vadd.f32 -1.0, %v1495_v61 }
 0x3f3   : > { %1069 = vrot.lane.b32.xlu1 %v1327_v0, %s1532_s30  ;;  %v1046_v3 = vadd.f32 %v1240_v39, %v1041_v63 }
 0x3f4   : > { %v1037_v4 = vsel %vm1012_vm3, %v1003_v28, %v1295_v2 }
 0x3f5   : > { %v1042_v5 = vmul.f32 %v1239_v52, %v1037_v4  ;;  %v1328_v8 = vpack.c.bf16 %v1046_v3, %v1046_v3 }
 0x3f7   : > { %1076 = vrot.lane.b32.xlu0 %v1328_v8, %s1534_s14  ;;  %v1047_v32 = vadd.f32 %v1240_v39, %v1042_v5 }
 0x3f9   : > { %v1329_v42 = vpack.c.bf16 %v1047_v32, %v1047_v32 }
 0x3fb   : > { %1084 = vrot.lane.b32.xlu1 %v1329_v42, %s1535_s16 }
 0x45d   : > { %v1055_v9 = vpop.permute.xlu1 %1054 }
 0x45e   : > { %1058 = vst.msk [vmem:[#allocation3] sm:$0xf] %vm1057_vm4, %v1055_v9 }
 0x461   : > { %v1062_v10 = vpop.permute.xlu0 %1061 }
 0x462   : > { %1065 = vst.msk [vmem:[#allocation3] sm:$0xf] %vm1064_vm5, %v1062_v10 }
 0x465   : > { %v1070_v12 = vpop.permute.xlu1 %1069 }
 0x466   : > { %1073 = vst.msk [vmem:[#allocation3] sm:$0xf] %vm1072_vm6, %v1070_v12 }
 0x469   : > { %v1077_v13 = vpop.permute.xlu0 %1076 }
 0x46a   : > { %1080 = vst.msk [vmem:[#allocation3] sm:$0xf] %vm1079_vm7, %v1077_v13 }
 0x46d   : > { %v1085_v14 = vpop.permute.xlu1 %1084 }
 0x46e   : > { %1088 = vst.msk [vmem:[#allocation3] sm:$0xf] %vm1087_vm8, %v1085_v14 }
 0x475   : > { %v1089_v56 = vld [vmem:[#allocation3] sm:$0xf] }
 0x476   : > { %1096 = vrot.lane.b32.xlu1 %v1089_v56, %s1526_s15  ;;  %1091 = vrot.lane.b32.xlu0 %v1089_v56, %s1512_s27  ;;  %s1234_s27 = sshll.u32 %s1883_s18, 3 }
 0x477   : > { %s381_s12 = scalar_lea.vmem %s1881_s11, %s1234_s27 }
 0x4e8   : > { %v1097_v16 = vpop.permute.xlu1 %1096  ;;  %v1092_v17 = vpop.permute.xlu0 %1091 }
 0x4e9   : > { %1095 = vst.msk [vmem:[#allocation3] sm:$0xf] %vm1094_vm9, %v1092_v17 }
 0x4ea   : > { %1100 = vst.msk [vmem:[#allocation3] sm:$0xf] %vm1099_vm10, %v1097_v16 }
 0x4f1   : > { %v1101_v59 = vld [vmem:[#allocation3] sm:$0xf] }
 0x4f2   : > { %v1301_v18 = vcombine.low %v1101_v59, %v1101_v59 }
 0x4f4   : > { %1105 = vrot.lane.b32.xlu0 %v1301_v18, %s1517_s13 }
 0x566   : > { %v1106_v20 = vpop.permute.xlu0 %1105 }
 0x567   : > { %v1109_v21 = vsel %vm471_vm0, %v1101_v59, %v1106_v20 }
 0x568   : > { %1401 = vmatmul.mubr.msk.bf16.vlgmr.msra.gmra.mxu1 %vm944_vm13, %v1109_v21 }
 0x628   : > { %v1152_v23 = vpop.f32.mrf.mxu1 }
 0x629   : > { %v1153_v24 = vadd.f32 %v1241_v22, %v1152_v23 }
 0x62a   : > { %v1402_v25 = vpop.f32.mrf.mxu1 }
 0x62b   : > { %v1161_v11 = vmin.f32 %v1153_v24, 0.0  ;;  %vm1159_vm0 = vcmp.gt.f32.partialorder %v1153_v24, 0.0 }
 0x62c   : > { %v1155_v1 = vpop.f32.mrf.mxu1 }
 0x62d   : > { %v1163_v26 = vmul.f32 1.442695, %v1161_v11  ;;  %v1156_v27 = vadd.f32 %v1241_v22, %v1155_v1 }
 0x62e   : > { %v1403_v44 = vpop.f32.mrf.mxu1 }
 0x62f   : > { %1496 = vpow2.f32 %v1163_v26  ;;  %v1162_v30 = vmin.f32 %v1156_v27, 0.0  ;;  %vm1160_vm11 = vcmp.gt.f32.partialorder %v1156_v27, 0.0 }
 0x631   : > { %v1165_v7 = vmul.f32 1.442695, %v1162_v30 }
 0x633   : > { %1498 = vpow2.f32 %v1165_v7 }
 0x63c   : > { %v1497_v31 = vpop.eup %1496 }
 0x63d   : > { %v1304_v45 = vadd.f32 -1.0, %v1497_v31 }
 0x63f   : > { %v1169_v34 = vsel %vm1159_vm0, %v1153_v24, %v1304_v45 }
 0x640   : > { %v1499_v28 = vpop.eup %1498 }
 0x641   : > { %v1305_v33 = vadd.f32 -1.0, %v1499_v28 }
 0x643   : > { %v1170_v35 = vsel %vm1160_vm11, %v1156_v27, %v1305_v33 }
 0x644   : > { %v1172_v36 = vadd.f32 %v1170_v35, %v1169_v34 }
 0x646   : > { %v1173_v52 = vmul.f32 0.5, %v1172_v36 }
 0x648   : > { %1174 = vst [vmem:[%s381_s12] sm:$0xff] %v1173_v52 }
 0x649 PF: > { %s21_s17 = sadd.s32 1, %s1506_s17  }
 0x64a   : > { %p18_p4 = scmp.ge.s32.totalorder %s21_s17, 4  }
 0x64c   :  { %20 = sbr.rel (!%p18_p4) target bundleno = 1 (0x1), region = 94 }

</bundles_post_ra>
